<compile_context>
chip_gen: v5e
topology: v5e:2x2
jax: 0.10.0
libtpu: 0.0.40
codegen_flags: <defaults>
</compile_context>

<pallas_src>
import jax
import jax.numpy as jnp
from jax.experimental import pallas as pl
from jax.experimental.pallas import tpu as pltpu


def seq2seq_kernel(x_ref, we_ih_ref, we_hh_ref, be_ref,
                   wd_ref, bd_ref, wo_ref, bo_ref,
                   out_ref, hd_sc):
    """Fused encoder-LSTM -> decoder-LSTM -> vocab projection.

    x_ref   : (T, Bp, V)      time-major, batch padded to sublane width
    we_ih   : (V, 4H)         encoder input weights
    we_hh   : (H, 4H)         encoder recurrent weights
    be      : (1, 4H)         encoder bias (b_ih + b_hh fused)
    wd      : (2H, 4H)        decoder stacked [W_ih; W_hh]
    bd      : (1, 4H)         decoder bias
    wo      : (H, Vp)         output projection, lane-padded to Vp (>=128)
    bo      : (1, Vp)
    out_ref : (T, Bp, Vp)     logits (lane-dense store)
    hd_sc   : (T, Bp, H)      VMEM scratch holding decoder hidden states
    """
    T, Bp, V = x_ref.shape
    H = we_hh_ref.shape[0]

    # --- hoisted, non-recurrent encoder input projection: one big MXU op ---
    x2d = x_ref[...].reshape(T * Bp, V)
    xg_all = jnp.dot(x2d, we_ih_ref[...],
                     preferred_element_type=jnp.float32).reshape(T, Bp, 4 * H)

    we_hh = we_hh_ref[...]
    be = be_ref[...]
    wd = wd_ref[...]
    bd = bd_ref[...]

    def gates_to_hc(gates, c):
        # Two full-vreg transcendental passes, then static lane slices.
        sig = jax.nn.sigmoid(gates)
        tah = jnp.tanh(gates)
        i = sig[:, 0 * H:1 * H]
        f = sig[:, 1 * H:2 * H]
        g = tah[:, 2 * H:3 * H]
        o = sig[:, 3 * H:4 * H]
        c_new = f * c + i * g
        h_new = o * jnp.tanh(c_new)
        return h_new, c_new

    h_e = jnp.zeros((Bp, H), jnp.float32)
    c_e = jnp.zeros((Bp, H), jnp.float32)
    h_d = jnp.zeros((Bp, H), jnp.float32)
    c_d = jnp.zeros((Bp, H), jnp.float32)

    # T is a small trace-time constant: fully unrolled static recurrence.
    for t in range(T):
        # Encoder cell: input projection already precomputed -> one small dot.
        gates_e = xg_all[t] + jnp.dot(h_e, we_hh,
                                      preferred_element_type=jnp.float32) + be
        h_e, c_e = gates_to_hc(gates_e, c_e)

        # Decoder cell: single matmul on concatenated [h_enc, h_dec].
        xh = jnp.concatenate([h_e, h_d], axis=-1)  # (Bp, 2H)
        gates_d = jnp.dot(xh, wd, preferred_element_type=jnp.float32) + bd
        h_d, c_d = gates_to_hc(gates_d, c_d)

        hd_sc[t] = h_d

    # --- batched output projection + single lane-dense store ---
    hall = hd_sc[...].reshape(T * Bp, H)
    logits = jnp.dot(hall, wo_ref[...],
                     preferred_element_type=jnp.float32) + bo_ref[...]
    out_ref[...] = logits.reshape(T, Bp, -1)


@jax.jit
def seq2seq_forward(x_btv, params):
    """y = decoder(encoder(x)).  x: (B, T, V) float32 -> (B, T, V) logits."""
    B, T, V = x_btv.shape
    H = params["enc_whh"].shape[0]

    Bp = max(8, ((B + 7) // 8) * 8)        # sublane-pad the batch
    Vp = ((V + 127) // 128) * 128          # lane-pad the vocab for dense stores

    # Batch-first -> time-major, pad batch.
    x_tbv = jnp.transpose(x_btv, (1, 0, 2))
    x_pad = jnp.pad(x_tbv, ((0, 0), (0, Bp - B), (0, 0)))

    # One-time weight plumbing (stack decoder W_ih/W_hh, lane-pad projection).
    wd = jnp.concatenate([params["dec_wih"], params["dec_whh"]], axis=0)
    wo = jnp.pad(params["dec_wout"], ((0, 0), (0, Vp - V)))
    bo = jnp.pad(params["dec_bout"], ((0, 0), (0, Vp - V)))

    out = pl.pallas_call(
        seq2seq_kernel,
        out_shape=jax.ShapeDtypeStruct((T, Bp, Vp), jnp.float32),
        scratch_shapes=[pltpu.VMEM((T, Bp, H), jnp.float32)],
    )(x_pad,
      params["enc_wih"], params["enc_whh"], params["enc_b"],
      wd, params["dec_b"], wo, bo)

    # TODO(synk): on v7x with real batch sizes, add a leading "parallel" batch
    # grid axis so both TensorCores share the (batch-parallel) recurrence.
    return jnp.transpose(out[:, :B, :V], (1, 0, 2))


def init_params(key, vocab_size, hidden):
    ks = jax.random.split(key, 8)
    scale = 0.1
    return {
        # Encoder LSTM: input = vocab one-hot, hidden = H
        "enc_wih": scale * jax.random.normal(ks[0], (vocab_size, 4 * hidden), jnp.float32),
        "enc_whh": scale * jax.random.normal(ks[1], (hidden, 4 * hidden), jnp.float32),
        "enc_b": scale * jax.random.normal(ks[2], (1, 4 * hidden), jnp.float32),
        # Decoder LSTM: input = H, hidden = H, projection H -> vocab
        "dec_wih": scale * jax.random.normal(ks[3], (hidden, 4 * hidden), jnp.float32),
        "dec_whh": scale * jax.random.normal(ks[4], (hidden, 4 * hidden), jnp.float32),
        "dec_b": scale * jax.random.normal(ks[5], (1, 4 * hidden), jnp.float32),
        "dec_wout": scale * jax.random.normal(ks[6], (hidden, vocab_size), jnp.float32),
        "dec_bout": scale * jax.random.normal(ks[7], (1, vocab_size), jnp.float32),
    }


def seq2seq_reference(x_btv, params):
    """Pure-JAX reference (PyTorch LSTM semantics) for correctness check."""
    B, T, V = x_btv.shape
    H = params["enc_whh"].shape[0]
    hi = jax.lax.Precision.HIGHEST

    def run_lstm(seq_bt, wih, whh, b):
        def step(carry, x_t):
            h, c = carry
            gates = (jnp.dot(x_t, wih, precision=hi)
                     + jnp.dot(h, whh, precision=hi) + b)
            i = jax.nn.sigmoid(gates[:, 0 * H:1 * H])
            f = jax.nn.sigmoid(gates[:, 1 * H:2 * H])
            g = jnp.tanh(gates[:, 2 * H:3 * H])
            o = jax.nn.sigmoid(gates[:, 3 * H:4 * H])
            c = f * c + i * g
            h = o * jnp.tanh(c)
            return (h, c), h

        init = (jnp.zeros((B, H), jnp.float32), jnp.zeros((B, H), jnp.float32))
        _, hs = jax.lax.scan(step, init, jnp.transpose(seq_bt, (1, 0, 2)))
        return jnp.transpose(hs, (1, 0, 2))  # (B, T, H)

    enc = run_lstm(x_btv, params["enc_wih"], params["enc_whh"], params["enc_b"])
    dec = run_lstm(enc, params["dec_wih"], params["dec_whh"], params["dec_b"])
    return jnp.dot(dec, params["dec_wout"], precision=hi) + params["dec_bout"]


if __name__ == "__main__":
    B, T, V, H = 2, 8, 16, 32  # batch, seq len (lenSeq/decim), vocab_size, hidden

    key = jax.random.PRNGKey(0)
    k_in, k_par = jax.random.split(key)

    # Deterministic synthetic one-hot input (B, T, V), like the chord one-hots.
    idx = jax.random.randint(k_in, (B, T), 0, V)
    x = jax.nn.one_hot(idx, V, dtype=jnp.float32)

    params = init_params(k_par, V, H)

    y = seq2seq_forward(x, params)
    y = jax.block_until_ready(y)
    assert y.shape == (B, T, V) and y.dtype == jnp.float32

    y_ref = jax.block_until_ready(seq2seq_reference(x, params))
    assert jnp.allclose(y, y_ref, atol=1e-3, rtol=1e-3), "mismatch vs reference"

    print("KERNEL_OK")
</pallas_src>

<mosaic_0001>
module attributes {stable_mosaic.version = 11 : i64} {
  func.func @seq2seq_kernel(%arg0: memref<8x8x16xf32, #tpu.memory_space<vmem>>, %arg1: memref<16x128xf32, #tpu.memory_space<vmem>>, %arg2: memref<32x128xf32, #tpu.memory_space<vmem>>, %arg3: memref<1x128xf32, #tpu.memory_space<vmem>>, %arg4: memref<64x128xf32, #tpu.memory_space<vmem>>, %arg5: memref<1x128xf32, #tpu.memory_space<vmem>>, %arg6: memref<32x128xf32, #tpu.memory_space<vmem>>, %arg7: memref<1x128xf32, #tpu.memory_space<vmem>>, %arg8: memref<8x8x128xf32, #tpu.memory_space<vmem>>, %arg9: memref<8x8x32xf32, #tpu.memory_space<vmem>>) attributes {dimension_semantics = [], scalar_prefetch = 0 : i64, scratch_operands = 1 : i64, tpu.core_type = #tpu.core_type<tc>} {
    %c0 = arith.constant 0 : index
    %c0_0 = arith.constant 0 : index
    %c0_1 = arith.constant 0 : index
    %0 = vector.load %arg0[%c0, %c0_0, %c0_1] : memref<8x8x16xf32, #tpu.memory_space<vmem>>, vector<8x8x16xf32>
    %1 = vector.shape_cast %0 : vector<8x8x16xf32> to vector<64x16xf32>
    %c0_2 = arith.constant 0 : index
    %c0_3 = arith.constant 0 : index
    %2 = vector.load %arg1[%c0_2, %c0_3] : memref<16x128xf32, #tpu.memory_space<vmem>>, vector<16x128xf32>
    %cst = arith.constant dense<0.000000e+00> : vector<64x128xf32>
    %3 = tpu.matmul %1, %2, %cst {dimension_numbers = #tpu.dot_dimension_numbers<[1], [0], [0], [1], [0, 0, 1, 1], [], []>} : vector<64x16xf32>, vector<16x128xf32>, vector<64x128xf32> -> vector<64x128xf32>
    %4 = vector.shape_cast %3 : vector<64x128xf32> to vector<8x8x128xf32>
    %c0_4 = arith.constant 0 : index
    %c0_5 = arith.constant 0 : index
    %5 = vector.load %arg2[%c0_4, %c0_5] : memref<32x128xf32, #tpu.memory_space<vmem>>, vector<32x128xf32>
    %c0_6 = arith.constant 0 : index
    %c0_7 = arith.constant 0 : index
    %6 = vector.load %arg3[%c0_6, %c0_7] : memref<1x128xf32, #tpu.memory_space<vmem>>, vector<1x128xf32>
    %c0_8 = arith.constant 0 : index
    %c0_9 = arith.constant 0 : index
    %7 = vector.load %arg4[%c0_8, %c0_9] : memref<64x128xf32, #tpu.memory_space<vmem>>, vector<64x128xf32>
    %c0_10 = arith.constant 0 : index
    %c0_11 = arith.constant 0 : index
    %8 = vector.load %arg5[%c0_10, %c0_11] : memref<1x128xf32, #tpu.memory_space<vmem>>, vector<1x128xf32>
    %cst_12 = arith.constant 0.000000e+00 : f32
    %9 = vector.broadcast %cst_12 : f32 to vector<8x32xf32>
    %cst_13 = arith.constant 0.000000e+00 : f32
    %10 = vector.broadcast %cst_13 : f32 to vector<8x32xf32>
    %cst_14 = arith.constant 0.000000e+00 : f32
    %11 = vector.broadcast %cst_14 : f32 to vector<8x32xf32>
    %cst_15 = arith.constant 0.000000e+00 : f32
    %12 = vector.broadcast %cst_15 : f32 to vector<8x32xf32>
    %13 = vector.extract_strided_slice %4 {offsets = [0, 0, 0], sizes = [1, 8, 128], strides = [1, 1, 1]} : vector<8x8x128xf32> to vector<1x8x128xf32>
    %14 = vector.shape_cast %13 : vector<1x8x128xf32> to vector<8x128xf32>
    %cst_16 = arith.constant dense<0.000000e+00> : vector<8x128xf32>
    %15 = tpu.matmul %9, %5, %cst_16 {dimension_numbers = #tpu.dot_dimension_numbers<[1], [0], [0], [1], [0, 0, 1, 1], [], []>} : vector<8x32xf32>, vector<32x128xf32>, vector<8x128xf32> -> vector<8x128xf32>
    %16 = arith.addf %14, %15 : vector<8x128xf32>
    %17 = vector.broadcast %6 : vector<1x128xf32> to vector<8x128xf32>
    %18 = arith.addf %16, %17 : vector<8x128xf32>
    %19 = arith.negf %18 : vector<8x128xf32>
    %20 = math.exp %19 : vector<8x128xf32>
    %cst_17 = arith.constant 1.000000e+00 : f32
    %21 = vector.broadcast %cst_17 : f32 to vector<8x128xf32>
    %22 = arith.addf %21, %20 : vector<8x128xf32>
    %23 = arith.divf %21, %22 : vector<8x128xf32>
    %24 = math.tanh %18 : vector<8x128xf32>
    %25 = vector.extract_strided_slice %23 {offsets = [0, 0], sizes = [8, 32], strides = [1, 1]} : vector<8x128xf32> to vector<8x32xf32>
    %26 = vector.extract_strided_slice %23 {offsets = [0, 32], sizes = [8, 32], strides = [1, 1]} : vector<8x128xf32> to vector<8x32xf32>
    %27 = vector.extract_strided_slice %24 {offsets = [0, 64], sizes = [8, 32], strides = [1, 1]} : vector<8x128xf32> to vector<8x32xf32>
    %28 = vector.extract_strided_slice %23 {offsets = [0, 96], sizes = [8, 32], strides = [1, 1]} : vector<8x128xf32> to vector<8x32xf32>
    %29 = arith.mulf %26, %10 : vector<8x32xf32>
    %30 = arith.mulf %25, %27 : vector<8x32xf32>
    %31 = arith.addf %29, %30 : vector<8x32xf32>
    %32 = math.tanh %31 : vector<8x32xf32>
    %33 = arith.mulf %28, %32 : vector<8x32xf32>
    %34 = tpu.concatenate %33, %11 in 1 : vector<8x32xf32>, vector<8x32xf32> -> vector<8x64xf32>
    %cst_18 = arith.constant dense<0.000000e+00> : vector<8x128xf32>
    %35 = tpu.matmul %34, %7, %cst_18 {dimension_numbers = #tpu.dot_dimension_numbers<[1], [0], [0], [1], [0, 0, 1, 1], [], []>} : vector<8x64xf32>, vector<64x128xf32>, vector<8x128xf32> -> vector<8x128xf32>
    %36 = vector.broadcast %8 : vector<1x128xf32> to vector<8x128xf32>
    %37 = arith.addf %35, %36 : vector<8x128xf32>
    %38 = arith.negf %37 : vector<8x128xf32>
    %39 = math.exp %38 : vector<8x128xf32>
    %cst_19 = arith.constant 1.000000e+00 : f32
    %40 = vector.broadcast %cst_19 : f32 to vector<8x128xf32>
    %41 = arith.addf %40, %39 : vector<8x128xf32>
    %42 = arith.divf %40, %41 : vector<8x128xf32>
    %43 = math.tanh %37 : vector<8x128xf32>
    %44 = vector.extract_strided_slice %42 {offsets = [0, 0], sizes = [8, 32], strides = [1, 1]} : vector<8x128xf32> to vector<8x32xf32>
    %45 = vector.extract_strided_slice %42 {offsets = [0, 32], sizes = [8, 32], strides = [1, 1]} : vector<8x128xf32> to vector<8x32xf32>
    %46 = vector.extract_strided_slice %43 {offsets = [0, 64], sizes = [8, 32], strides = [1, 1]} : vector<8x128xf32> to vector<8x32xf32>
    %47 = vector.extract_strided_slice %42 {offsets = [0, 96], sizes = [8, 32], strides = [1, 1]} : vector<8x128xf32> to vector<8x32xf32>
    %48 = arith.mulf %45, %12 : vector<8x32xf32>
    %49 = arith.mulf %44, %46 : vector<8x32xf32>
    %50 = arith.addf %48, %49 : vector<8x32xf32>
    %51 = math.tanh %50 : vector<8x32xf32>
    %52 = arith.mulf %47, %51 : vector<8x32xf32>
    %c0_20 = arith.constant 0 : index
    %c0_21 = arith.constant 0 : index
    %c0_22 = arith.constant 0 : index
    %53 = vector.load %arg9[%c0_20, %c0_21, %c0_22] : memref<8x8x32xf32, #tpu.memory_space<vmem>>, vector<1x8x32xf32>
    %54 = vector.shape_cast %53 : vector<1x8x32xf32> to vector<8x32xf32>
    %55 = vector.shape_cast %52 : vector<8x32xf32> to vector<1x8x32xf32>
    tpu.vector_store %arg9[%c0_20, %c0_21, %c0_22], %55 {strides = array<i32>} : memref<8x8x32xf32, #tpu.memory_space<vmem>>, vector<1x8x32xf32>,
    %56 = vector.extract_strided_slice %4 {offsets = [1, 0, 0], sizes = [1, 8, 128], strides = [1, 1, 1]} : vector<8x8x128xf32> to vector<1x8x128xf32>
    %57 = vector.shape_cast %56 : vector<1x8x128xf32> to vector<8x128xf32>
    %cst_23 = arith.constant dense<0.000000e+00> : vector<8x128xf32>
    %58 = tpu.matmul %33, %5, %cst_23 {dimension_numbers = #tpu.dot_dimension_numbers<[1], [0], [0], [1], [0, 0, 1, 1], [], []>} : vector<8x32xf32>, vector<32x128xf32>, vector<8x128xf32> -> vector<8x128xf32>
    %59 = arith.addf %57, %58 : vector<8x128xf32>
    %60 = vector.broadcast %6 : vector<1x128xf32> to vector<8x128xf32>
    %61 = arith.addf %59, %60 : vector<8x128xf32>
    %62 = arith.negf %61 : vector<8x128xf32>
    %63 = math.exp %62 : vector<8x128xf32>
    %cst_24 = arith.constant 1.000000e+00 : f32
    %64 = vector.broadcast %cst_24 : f32 to vector<8x128xf32>
    %65 = arith.addf %64, %63 : vector<8x128xf32>
    %66 = arith.divf %64, %65 : vector<8x128xf32>
    %67 = math.tanh %61 : vector<8x128xf32>
    %68 = vector.extract_strided_slice %66 {offsets = [0, 0], sizes = [8, 32], strides = [1, 1]} : vector<8x128xf32> to vector<8x32xf32>
    %69 = vector.extract_strided_slice %66 {offsets = [0, 32], sizes = [8, 32], strides = [1, 1]} : vector<8x128xf32> to vector<8x32xf32>
    %70 = vector.extract_strided_slice %67 {offsets = [0, 64], sizes = [8, 32], strides = [1, 1]} : vector<8x128xf32> to vector<8x32xf32>
    %71 = vector.extract_strided_slice %66 {offsets = [0, 96], sizes = [8, 32], strides = [1, 1]} : vector<8x128xf32> to vector<8x32xf32>
    %72 = arith.mulf %69, %31 : vector<8x32xf32>
    %73 = arith.mulf %68, %70 : vector<8x32xf32>
    %74 = arith.addf %72, %73 : vector<8x32xf32>
    %75 = math.tanh %74 : vector<8x32xf32>
    %76 = arith.mulf %71, %75 : vector<8x32xf32>
    %77 = tpu.concatenate %76, %52 in 1 : vector<8x32xf32>, vector<8x32xf32> -> vector<8x64xf32>
    %cst_25 = arith.constant dense<0.000000e+00> : vector<8x128xf32>
    %78 = tpu.matmul %77, %7, %cst_25 {dimension_numbers = #tpu.dot_dimension_numbers<[1], [0], [0], [1], [0, 0, 1, 1], [], []>} : vector<8x64xf32>, vector<64x128xf32>, vector<8x128xf32> -> vector<8x128xf32>
    %79 = vector.broadcast %8 : vector<1x128xf32> to vector<8x128xf32>
    %80 = arith.addf %78, %79 : vector<8x128xf32>
    %81 = arith.negf %80 : vector<8x128xf32>
    %82 = math.exp %81 : vector<8x128xf32>
    %cst_26 = arith.constant 1.000000e+00 : f32
    %83 = vector.broadcast %cst_26 : f32 to vector<8x128xf32>
    %84 = arith.addf %83, %82 : vector<8x128xf32>
    %85 = arith.divf %83, %84 : vector<8x128xf32>
    %86 = math.tanh %80 : vector<8x128xf32>
    %87 = vector.extract_strided_slice %85 {offsets = [0, 0], sizes = [8, 32], strides = [1, 1]} : vector<8x128xf32> to vector<8x32xf32>
    %88 = vector.extract_strided_slice %85 {offsets = [0, 32], sizes = [8, 32], strides = [1, 1]} : vector<8x128xf32> to vector<8x32xf32>
    %89 = vector.extract_strided_slice %86 {offsets = [0, 64], sizes = [8, 32], strides = [1, 1]} : vector<8x128xf32> to vector<8x32xf32>
    %90 = vector.extract_strided_slice %85 {offsets = [0, 96], sizes = [8, 32], strides = [1, 1]} : vector<8x128xf32> to vector<8x32xf32>
    %91 = arith.mulf %88, %50 : vector<8x32xf32>
    %92 = arith.mulf %87, %89 : vector<8x32xf32>
    %93 = arith.addf %91, %92 : vector<8x32xf32>
    %94 = math.tanh %93 : vector<8x32xf32>
    %95 = arith.mulf %90, %94 : vector<8x32xf32>
    %c1 = arith.constant 1 : index
    %c0_27 = arith.constant 0 : index
    %c0_28 = arith.constant 0 : index
    %96 = vector.load %arg9[%c1, %c0_27, %c0_28] : memref<8x8x32xf32, #tpu.memory_space<vmem>>, vector<1x8x32xf32>
    %97 = vector.shape_cast %96 : vector<1x8x32xf32> to vector<8x32xf32>
    %98 = vector.shape_cast %95 : vector<8x32xf32> to vector<1x8x32xf32>
    tpu.vector_store %arg9[%c1, %c0_27, %c0_28], %98 {strides = array<i32>} : memref<8x8x32xf32, #tpu.memory_space<vmem>>, vector<1x8x32xf32>,
    %99 = vector.extract_strided_slice %4 {offsets = [2, 0, 0], sizes = [1, 8, 128], strides = [1, 1, 1]} : vector<8x8x128xf32> to vector<1x8x128xf32>
    %100 = vector.shape_cast %99 : vector<1x8x128xf32> to vector<8x128xf32>
    %cst_29 = arith.constant dense<0.000000e+00> : vector<8x128xf32>
    %101 = tpu.matmul %76, %5, %cst_29 {dimension_numbers = #tpu.dot_dimension_numbers<[1], [0], [0], [1], [0, 0, 1, 1], [], []>} : vector<8x32xf32>, vector<32x128xf32>, vector<8x128xf32> -> vector<8x128xf32>
    %102 = arith.addf %100, %101 : vector<8x128xf32>
    %103 = vector.broadcast %6 : vector<1x128xf32> to vector<8x128xf32>
    %104 = arith.addf %102, %103 : vector<8x128xf32>
    %105 = arith.negf %104 : vector<8x128xf32>
    %106 = math.exp %105 : vector<8x128xf32>
    %cst_30 = arith.constant 1.000000e+00 : f32
    %107 = vector.broadcast %cst_30 : f32 to vector<8x128xf32>
    %108 = arith.addf %107, %106 : vector<8x128xf32>
    %109 = arith.divf %107, %108 : vector<8x128xf32>
    %110 = math.tanh %104 : vector<8x128xf32>
    %111 = vector.extract_strided_slice %109 {offsets = [0, 0], sizes = [8, 32], strides = [1, 1]} : vector<8x128xf32> to vector<8x32xf32>
    %112 = vector.extract_strided_slice %109 {offsets = [0, 32], sizes = [8, 32], strides = [1, 1]} : vector<8x128xf32> to vector<8x32xf32>
    %113 = vector.extract_strided_slice %110 {offsets = [0, 64], sizes = [8, 32], strides = [1, 1]} : vector<8x128xf32> to vector<8x32xf32>
    %114 = vector.extract_strided_slice %109 {offsets = [0, 96], sizes = [8, 32], strides = [1, 1]} : vector<8x128xf32> to vector<8x32xf32>
    %115 = arith.mulf %112, %74 : vector<8x32xf32>
    %116 = arith.mulf %111, %113 : vector<8x32xf32>
    %117 = arith.addf %115, %116 : vector<8x32xf32>
    %118 = math.tanh %117 : vector<8x32xf32>
    %119 = arith.mulf %114, %118 : vector<8x32xf32>
    %120 = tpu.concatenate %119, %95 in 1 : vector<8x32xf32>, vector<8x32xf32> -> vector<8x64xf32>
    %cst_31 = arith.constant dense<0.000000e+00> : vector<8x128xf32>
    %121 = tpu.matmul %120, %7, %cst_31 {dimension_numbers = #tpu.dot_dimension_numbers<[1], [0], [0], [1], [0, 0, 1, 1], [], []>} : vector<8x64xf32>, vector<64x128xf32>, vector<8x128xf32> -> vector<8x128xf32>
    %122 = vector.broadcast %8 : vector<1x128xf32> to vector<8x128xf32>
    %123 = arith.addf %121, %122 : vector<8x128xf32>
    %124 = arith.negf %123 : vector<8x128xf32>
    %125 = math.exp %124 : vector<8x128xf32>
    %cst_32 = arith.constant 1.000000e+00 : f32
    %126 = vector.broadcast %cst_32 : f32 to vector<8x128xf32>
    %127 = arith.addf %126, %125 : vector<8x128xf32>
    %128 = arith.divf %126, %127 : vector<8x128xf32>
    %129 = math.tanh %123 : vector<8x128xf32>
    %130 = vector.extract_strided_slice %128 {offsets = [0, 0], sizes = [8, 32], strides = [1, 1]} : vector<8x128xf32> to vector<8x32xf32>
    %131 = vector.extract_strided_slice %128 {offsets = [0, 32], sizes = [8, 32], strides = [1, 1]} : vector<8x128xf32> to vector<8x32xf32>
    %132 = vector.extract_strided_slice %129 {offsets = [0, 64], sizes = [8, 32], strides = [1, 1]} : vector<8x128xf32> to vector<8x32xf32>
    %133 = vector.extract_strided_slice %128 {offsets = [0, 96], sizes = [8, 32], strides = [1, 1]} : vector<8x128xf32> to vector<8x32xf32>
    %134 = arith.mulf %131, %93 : vector<8x32xf32>
    %135 = arith.mulf %130, %132 : vector<8x32xf32>
    %136 = arith.addf %134, %135 : vector<8x32xf32>
    %137 = math.tanh %136 : vector<8x32xf32>
    %138 = arith.mulf %133, %137 : vector<8x32xf32>
    %c2 = arith.constant 2 : index
    %c0_33 = arith.constant 0 : index
    %c0_34 = arith.constant 0 : index
    %139 = vector.load %arg9[%c2, %c0_33, %c0_34] : memref<8x8x32xf32, #tpu.memory_space<vmem>>, vector<1x8x32xf32>
    %140 = vector.shape_cast %139 : vector<1x8x32xf32> to vector<8x32xf32>
    %141 = vector.shape_cast %138 : vector<8x32xf32> to vector<1x8x32xf32>
    tpu.vector_store %arg9[%c2, %c0_33, %c0_34], %141 {strides = array<i32>} : memref<8x8x32xf32, #tpu.memory_space<vmem>>, vector<1x8x32xf32>,
    %142 = vector.extract_strided_slice %4 {offsets = [3, 0, 0], sizes = [1, 8, 128], strides = [1, 1, 1]} : vector<8x8x128xf32> to vector<1x8x128xf32>
    %143 = vector.shape_cast %142 : vector<1x8x128xf32> to vector<8x128xf32>
    %cst_35 = arith.constant dense<0.000000e+00> : vector<8x128xf32>
    %144 = tpu.matmul %119, %5, %cst_35 {dimension_numbers = #tpu.dot_dimension_numbers<[1], [0], [0], [1], [0, 0, 1, 1], [], []>} : vector<8x32xf32>, vector<32x128xf32>, vector<8x128xf32> -> vector<8x128xf32>
    %145 = arith.addf %143, %144 : vector<8x128xf32>
    %146 = vector.broadcast %6 : vector<1x128xf32> to vector<8x128xf32>
    %147 = arith.addf %145, %146 : vector<8x128xf32>
    %148 = arith.negf %147 : vector<8x128xf32>
    %149 = math.exp %148 : vector<8x128xf32>
    %cst_36 = arith.constant 1.000000e+00 : f32
    %150 = vector.broadcast %cst_36 : f32 to vector<8x128xf32>
    %151 = arith.addf %150, %149 : vector<8x128xf32>
    %152 = arith.divf %150, %151 : vector<8x128xf32>
    %153 = math.tanh %147 : vector<8x128xf32>
    %154 = vector.extract_strided_slice %152 {offsets = [0, 0], sizes = [8, 32], strides = [1, 1]} : vector<8x128xf32> to vector<8x32xf32>
    %155 = vector.extract_strided_slice %152 {offsets = [0, 32], sizes = [8, 32], strides = [1, 1]} : vector<8x128xf32> to vector<8x32xf32>
    %156 = vector.extract_strided_slice %153 {offsets = [0, 64], sizes = [8, 32], strides = [1, 1]} : vector<8x128xf32> to vector<8x32xf32>
    %157 = vector.extract_strided_slice %152 {offsets = [0, 96], sizes = [8, 32], strides = [1, 1]} : vector<8x128xf32> to vector<8x32xf32>
    %158 = arith.mulf %155, %117 : vector<8x32xf32>
    %159 = arith.mulf %154, %156 : vector<8x32xf32>
    %160 = arith.addf %158, %159 : vector<8x32xf32>
    %161 = math.tanh %160 : vector<8x32xf32>
    %162 = arith.mulf %157, %161 : vector<8x32xf32>
    %163 = tpu.concatenate %162, %138 in 1 : vector<8x32xf32>, vector<8x32xf32> -> vector<8x64xf32>
    %cst_37 = arith.constant dense<0.000000e+00> : vector<8x128xf32>
    %164 = tpu.matmul %163, %7, %cst_37 {dimension_numbers = #tpu.dot_dimension_numbers<[1], [0], [0], [1], [0, 0, 1, 1], [], []>} : vector<8x64xf32>, vector<64x128xf32>, vector<8x128xf32> -> vector<8x128xf32>
    %165 = vector.broadcast %8 : vector<1x128xf32> to vector<8x128xf32>
    %166 = arith.addf %164, %165 : vector<8x128xf32>
    %167 = arith.negf %166 : vector<8x128xf32>
    %168 = math.exp %167 : vector<8x128xf32>
    %cst_38 = arith.constant 1.000000e+00 : f32
    %169 = vector.broadcast %cst_38 : f32 to vector<8x128xf32>
    %170 = arith.addf %169, %168 : vector<8x128xf32>
    %171 = arith.divf %169, %170 : vector<8x128xf32>
    %172 = math.tanh %166 : vector<8x128xf32>
    %173 = vector.extract_strided_slice %171 {offsets = [0, 0], sizes = [8, 32], strides = [1, 1]} : vector<8x128xf32> to vector<8x32xf32>
    %174 = vector.extract_strided_slice %171 {offsets = [0, 32], sizes = [8, 32], strides = [1, 1]} : vector<8x128xf32> to vector<8x32xf32>
    %175 = vector.extract_strided_slice %172 {offsets = [0, 64], sizes = [8, 32], strides = [1, 1]} : vector<8x128xf32> to vector<8x32xf32>
    %176 = vector.extract_strided_slice %171 {offsets = [0, 96], sizes = [8, 32], strides = [1, 1]} : vector<8x128xf32> to vector<8x32xf32>
    %177 = arith.mulf %174, %136 : vector<8x32xf32>
    %178 = arith.mulf %173, %175 : vector<8x32xf32>
    %179 = arith.addf %177, %178 : vector<8x32xf32>
    %180 = math.tanh %179 : vector<8x32xf32>
    %181 = arith.mulf %176, %180 : vector<8x32xf32>
    %c3 = arith.constant 3 : index
    %c0_39 = arith.constant 0 : index
    %c0_40 = arith.constant 0 : index
    %182 = vector.load %arg9[%c3, %c0_39, %c0_40] : memref<8x8x32xf32, #tpu.memory_space<vmem>>, vector<1x8x32xf32>
    %183 = vector.shape_cast %182 : vector<1x8x32xf32> to vector<8x32xf32>
    %184 = vector.shape_cast %181 : vector<8x32xf32> to vector<1x8x32xf32>
    tpu.vector_store %arg9[%c3, %c0_39, %c0_40], %184 {strides = array<i32>} : memref<8x8x32xf32, #tpu.memory_space<vmem>>, vector<1x8x32xf32>,
    %185 = vector.extract_strided_slice %4 {offsets = [4, 0, 0], sizes = [1, 8, 128], strides = [1, 1, 1]} : vector<8x8x128xf32> to vector<1x8x128xf32>
    %186 = vector.shape_cast %185 : vector<1x8x128xf32> to vector<8x128xf32>
    %cst_41 = arith.constant dense<0.000000e+00> : vector<8x128xf32>
    %187 = tpu.matmul %162, %5, %cst_41 {dimension_numbers = #tpu.dot_dimension_numbers<[1], [0], [0], [1], [0, 0, 1, 1], [], []>} : vector<8x32xf32>, vector<32x128xf32>, vector<8x128xf32> -> vector<8x128xf32>
    %188 = arith.addf %186, %187 : vector<8x128xf32>
    %189 = vector.broadcast %6 : vector<1x128xf32> to vector<8x128xf32>
    %190 = arith.addf %188, %189 : vector<8x128xf32>
    %191 = arith.negf %190 : vector<8x128xf32>
    %192 = math.exp %191 : vector<8x128xf32>
    %cst_42 = arith.constant 1.000000e+00 : f32
    %193 = vector.broadcast %cst_42 : f32 to vector<8x128xf32>
    %194 = arith.addf %193, %192 : vector<8x128xf32>
    %195 = arith.divf %193, %194 : vector<8x128xf32>
    %196 = math.tanh %190 : vector<8x128xf32>
    %197 = vector.extract_strided_slice %195 {offsets = [0, 0], sizes = [8, 32], strides = [1, 1]} : vector<8x128xf32> to vector<8x32xf32>
    %198 = vector.extract_strided_slice %195 {offsets = [0, 32], sizes = [8, 32], strides = [1, 1]} : vector<8x128xf32> to vector<8x32xf32>
    %199 = vector.extract_strided_slice %196 {offsets = [0, 64], sizes = [8, 32], strides = [1, 1]} : vector<8x128xf32> to vector<8x32xf32>
    %200 = vector.extract_strided_slice %195 {offsets = [0, 96], sizes = [8, 32], strides = [1, 1]} : vector<8x128xf32> to vector<8x32xf32>
    %201 = arith.mulf %198, %160 : vector<8x32xf32>
    %202 = arith.mulf %197, %199 : vector<8x32xf32>
    %203 = arith.addf %201, %202 : vector<8x32xf32>
    %204 = math.tanh %203 : vector<8x32xf32>
    %205 = arith.mulf %200, %204 : vector<8x32xf32>
    %206 = tpu.concatenate %205, %181 in 1 : vector<8x32xf32>, vector<8x32xf32> -> vector<8x64xf32>
    %cst_43 = arith.constant dense<0.000000e+00> : vector<8x128xf32>
    %207 = tpu.matmul %206, %7, %cst_43 {dimension_numbers = #tpu.dot_dimension_numbers<[1], [0], [0], [1], [0, 0, 1, 1], [], []>} : vector<8x64xf32>, vector<64x128xf32>, vector<8x128xf32> -> vector<8x128xf32>
    %208 = vector.broadcast %8 : vector<1x128xf32> to vector<8x128xf32>
    %209 = arith.addf %207, %208 : vector<8x128xf32>
    %210 = arith.negf %209 : vector<8x128xf32>
    %211 = math.exp %210 : vector<8x128xf32>
    %cst_44 = arith.constant 1.000000e+00 : f32
    %212 = vector.broadcast %cst_44 : f32 to vector<8x128xf32>
    %213 = arith.addf %212, %211 : vector<8x128xf32>
    %214 = arith.divf %212, %213 : vector<8x128xf32>
    %215 = math.tanh %209 : vector<8x128xf32>
    %216 = vector.extract_strided_slice %214 {offsets = [0, 0], sizes = [8, 32], strides = [1, 1]} : vector<8x128xf32> to vector<8x32xf32>
    %217 = vector.extract_strided_slice %214 {offsets = [0, 32], sizes = [8, 32], strides = [1, 1]} : vector<8x128xf32> to vector<8x32xf32>
    %218 = vector.extract_strided_slice %215 {offsets = [0, 64], sizes = [8, 32], strides = [1, 1]} : vector<8x128xf32> to vector<8x32xf32>
    %219 = vector.extract_strided_slice %214 {offsets = [0, 96], sizes = [8, 32], strides = [1, 1]} : vector<8x128xf32> to vector<8x32xf32>
    %220 = arith.mulf %217, %179 : vector<8x32xf32>
    %221 = arith.mulf %216, %218 : vector<8x32xf32>
    %222 = arith.addf %220, %221 : vector<8x32xf32>
    %223 = math.tanh %222 : vector<8x32xf32>
    %224 = arith.mulf %219, %223 : vector<8x32xf32>
    %c4 = arith.constant 4 : index
    %c0_45 = arith.constant 0 : index
    %c0_46 = arith.constant 0 : index
    %225 = vector.load %arg9[%c4, %c0_45, %c0_46] : memref<8x8x32xf32, #tpu.memory_space<vmem>>, vector<1x8x32xf32>
    %226 = vector.shape_cast %225 : vector<1x8x32xf32> to vector<8x32xf32>
    %227 = vector.shape_cast %224 : vector<8x32xf32> to vector<1x8x32xf32>
    tpu.vector_store %arg9[%c4, %c0_45, %c0_46], %227 {strides = array<i32>} : memref<8x8x32xf32, #tpu.memory_space<vmem>>, vector<1x8x32xf32>,
    %228 = vector.extract_strided_slice %4 {offsets = [5, 0, 0], sizes = [1, 8, 128], strides = [1, 1, 1]} : vector<8x8x128xf32> to vector<1x8x128xf32>
    %229 = vector.shape_cast %228 : vector<1x8x128xf32> to vector<8x128xf32>
    %cst_47 = arith.constant dense<0.000000e+00> : vector<8x128xf32>
    %230 = tpu.matmul %205, %5, %cst_47 {dimension_numbers = #tpu.dot_dimension_numbers<[1], [0], [0], [1], [0, 0, 1, 1], [], []>} : vector<8x32xf32>, vector<32x128xf32>, vector<8x128xf32> -> vector<8x128xf32>
    %231 = arith.addf %229, %230 : vector<8x128xf32>
    %232 = vector.broadcast %6 : vector<1x128xf32> to vector<8x128xf32>
    %233 = arith.addf %231, %232 : vector<8x128xf32>
    %234 = arith.negf %233 : vector<8x128xf32>
    %235 = math.exp %234 : vector<8x128xf32>
    %cst_48 = arith.constant 1.000000e+00 : f32
    %236 = vector.broadcast %cst_48 : f32 to vector<8x128xf32>
    %237 = arith.addf %236, %235 : vector<8x128xf32>
    %238 = arith.divf %236, %237 : vector<8x128xf32>
    %239 = math.tanh %233 : vector<8x128xf32>
    %240 = vector.extract_strided_slice %238 {offsets = [0, 0], sizes = [8, 32], strides = [1, 1]} : vector<8x128xf32> to vector<8x32xf32>
    %241 = vector.extract_strided_slice %238 {offsets = [0, 32], sizes = [8, 32], strides = [1, 1]} : vector<8x128xf32> to vector<8x32xf32>
    %242 = vector.extract_strided_slice %239 {offsets = [0, 64], sizes = [8, 32], strides = [1, 1]} : vector<8x128xf32> to vector<8x32xf32>
    %243 = vector.extract_strided_slice %238 {offsets = [0, 96], sizes = [8, 32], strides = [1, 1]} : vector<8x128xf32> to vector<8x32xf32>
    %244 = arith.mulf %241, %203 : vector<8x32xf32>
    %245 = arith.mulf %240, %242 : vector<8x32xf32>
    %246 = arith.addf %244, %245 : vector<8x32xf32>
    %247 = math.tanh %246 : vector<8x32xf32>
    %248 = arith.mulf %243, %247 : vector<8x32xf32>
    %249 = tpu.concatenate %248, %224 in 1 : vector<8x32xf32>, vector<8x32xf32> -> vector<8x64xf32>
    %cst_49 = arith.constant dense<0.000000e+00> : vector<8x128xf32>
    %250 = tpu.matmul %249, %7, %cst_49 {dimension_numbers = #tpu.dot_dimension_numbers<[1], [0], [0], [1], [0, 0, 1, 1], [], []>} : vector<8x64xf32>, vector<64x128xf32>, vector<8x128xf32> -> vector<8x128xf32>
    %251 = vector.broadcast %8 : vector<1x128xf32> to vector<8x128xf32>
    %252 = arith.addf %250, %251 : vector<8x128xf32>
    %253 = arith.negf %252 : vector<8x128xf32>
    %254 = math.exp %253 : vector<8x128xf32>
    %cst_50 = arith.constant 1.000000e+00 : f32
    %255 = vector.broadcast %cst_50 : f32 to vector<8x128xf32>
    %256 = arith.addf %255, %254 : vector<8x128xf32>
    %257 = arith.divf %255, %256 : vector<8x128xf32>
    %258 = math.tanh %252 : vector<8x128xf32>
    %259 = vector.extract_strided_slice %257 {offsets = [0, 0], sizes = [8, 32], strides = [1, 1]} : vector<8x128xf32> to vector<8x32xf32>
    %260 = vector.extract_strided_slice %257 {offsets = [0, 32], sizes = [8, 32], strides = [1, 1]} : vector<8x128xf32> to vector<8x32xf32>
    %261 = vector.extract_strided_slice %258 {offsets = [0, 64], sizes = [8, 32], strides = [1, 1]} : vector<8x128xf32> to vector<8x32xf32>
    %262 = vector.extract_strided_slice %257 {offsets = [0, 96], sizes = [8, 32], strides = [1, 1]} : vector<8x128xf32> to vector<8x32xf32>
    %263 = arith.mulf %260, %222 : vector<8x32xf32>
    %264 = arith.mulf %259, %261 : vector<8x32xf32>
    %265 = arith.addf %263, %264 : vector<8x32xf32>
    %266 = math.tanh %265 : vector<8x32xf32>
    %267 = arith.mulf %262, %266 : vector<8x32xf32>
    %c5 = arith.constant 5 : index
    %c0_51 = arith.constant 0 : index
    %c0_52 = arith.constant 0 : index
    %268 = vector.load %arg9[%c5, %c0_51, %c0_52] : memref<8x8x32xf32, #tpu.memory_space<vmem>>, vector<1x8x32xf32>
    %269 = vector.shape_cast %268 : vector<1x8x32xf32> to vector<8x32xf32>
    %270 = vector.shape_cast %267 : vector<8x32xf32> to vector<1x8x32xf32>
    tpu.vector_store %arg9[%c5, %c0_51, %c0_52], %270 {strides = array<i32>} : memref<8x8x32xf32, #tpu.memory_space<vmem>>, vector<1x8x32xf32>,
    %271 = vector.extract_strided_slice %4 {offsets = [6, 0, 0], sizes = [1, 8, 128], strides = [1, 1, 1]} : vector<8x8x128xf32> to vector<1x8x128xf32>
    %272 = vector.shape_cast %271 : vector<1x8x128xf32> to vector<8x128xf32>
    %cst_53 = arith.constant dense<0.000000e+00> : vector<8x128xf32>
    %273 = tpu.matmul %248, %5, %cst_53 {dimension_numbers = #tpu.dot_dimension_numbers<[1], [0], [0], [1], [0, 0, 1, 1], [], []>} : vector<8x32xf32>, vector<32x128xf32>, vector<8x128xf32> -> vector<8x128xf32>
    %274 = arith.addf %272, %273 : vector<8x128xf32>
    %275 = vector.broadcast %6 : vector<1x128xf32> to vector<8x128xf32>
    %276 = arith.addf %274, %275 : vector<8x128xf32>
    %277 = arith.negf %276 : vector<8x128xf32>
    %278 = math.exp %277 : vector<8x128xf32>
    %cst_54 = arith.constant 1.000000e+00 : f32
    %279 = vector.broadcast %cst_54 : f32 to vector<8x128xf32>
    %280 = arith.addf %279, %278 : vector<8x128xf32>
    %281 = arith.divf %279, %280 : vector<8x128xf32>
    %282 = math.tanh %276 : vector<8x128xf32>
    %283 = vector.extract_strided_slice %281 {offsets = [0, 0], sizes = [8, 32], strides = [1, 1]} : vector<8x128xf32> to vector<8x32xf32>
    %284 = vector.extract_strided_slice %281 {offsets = [0, 32], sizes = [8, 32], strides = [1, 1]} : vector<8x128xf32> to vector<8x32xf32>
    %285 = vector.extract_strided_slice %282 {offsets = [0, 64], sizes = [8, 32], strides = [1, 1]} : vector<8x128xf32> to vector<8x32xf32>
    %286 = vector.extract_strided_slice %281 {offsets = [0, 96], sizes = [8, 32], strides = [1, 1]} : vector<8x128xf32> to vector<8x32xf32>
    %287 = arith.mulf %284, %246 : vector<8x32xf32>
    %288 = arith.mulf %283, %285 : vector<8x32xf32>
    %289 = arith.addf %287, %288 : vector<8x32xf32>
    %290 = math.tanh %289 : vector<8x32xf32>
    %291 = arith.mulf %286, %290 : vector<8x32xf32>
    %292 = tpu.concatenate %291, %267 in 1 : vector<8x32xf32>, vector<8x32xf32> -> vector<8x64xf32>
    %cst_55 = arith.constant dense<0.000000e+00> : vector<8x128xf32>
    %293 = tpu.matmul %292, %7, %cst_55 {dimension_numbers = #tpu.dot_dimension_numbers<[1], [0], [0], [1], [0, 0, 1, 1], [], []>} : vector<8x64xf32>, vector<64x128xf32>, vector<8x128xf32> -> vector<8x128xf32>
    %294 = vector.broadcast %8 : vector<1x128xf32> to vector<8x128xf32>
    %295 = arith.addf %293, %294 : vector<8x128xf32>
    %296 = arith.negf %295 : vector<8x128xf32>
    %297 = math.exp %296 : vector<8x128xf32>
    %cst_56 = arith.constant 1.000000e+00 : f32
    %298 = vector.broadcast %cst_56 : f32 to vector<8x128xf32>
    %299 = arith.addf %298, %297 : vector<8x128xf32>
    %300 = arith.divf %298, %299 : vector<8x128xf32>
    %301 = math.tanh %295 : vector<8x128xf32>
    %302 = vector.extract_strided_slice %300 {offsets = [0, 0], sizes = [8, 32], strides = [1, 1]} : vector<8x128xf32> to vector<8x32xf32>
    %303 = vector.extract_strided_slice %300 {offsets = [0, 32], sizes = [8, 32], strides = [1, 1]} : vector<8x128xf32> to vector<8x32xf32>
    %304 = vector.extract_strided_slice %301 {offsets = [0, 64], sizes = [8, 32], strides = [1, 1]} : vector<8x128xf32> to vector<8x32xf32>
    %305 = vector.extract_strided_slice %300 {offsets = [0, 96], sizes = [8, 32], strides = [1, 1]} : vector<8x128xf32> to vector<8x32xf32>
    %306 = arith.mulf %303, %265 : vector<8x32xf32>
    %307 = arith.mulf %302, %304 : vector<8x32xf32>
    %308 = arith.addf %306, %307 : vector<8x32xf32>
    %309 = math.tanh %308 : vector<8x32xf32>
    %310 = arith.mulf %305, %309 : vector<8x32xf32>
    %c6 = arith.constant 6 : index
    %c0_57 = arith.constant 0 : index
    %c0_58 = arith.constant 0 : index
    %311 = vector.load %arg9[%c6, %c0_57, %c0_58] : memref<8x8x32xf32, #tpu.memory_space<vmem>>, vector<1x8x32xf32>
    %312 = vector.shape_cast %311 : vector<1x8x32xf32> to vector<8x32xf32>
    %313 = vector.shape_cast %310 : vector<8x32xf32> to vector<1x8x32xf32>
    tpu.vector_store %arg9[%c6, %c0_57, %c0_58], %313 {strides = array<i32>} : memref<8x8x32xf32, #tpu.memory_space<vmem>>, vector<1x8x32xf32>,
    %314 = vector.extract_strided_slice %4 {offsets = [7, 0, 0], sizes = [1, 8, 128], strides = [1, 1, 1]} : vector<8x8x128xf32> to vector<1x8x128xf32>
    %315 = vector.shape_cast %314 : vector<1x8x128xf32> to vector<8x128xf32>
    %cst_59 = arith.constant dense<0.000000e+00> : vector<8x128xf32>
    %316 = tpu.matmul %291, %5, %cst_59 {dimension_numbers = #tpu.dot_dimension_numbers<[1], [0], [0], [1], [0, 0, 1, 1], [], []>} : vector<8x32xf32>, vector<32x128xf32>, vector<8x128xf32> -> vector<8x128xf32>
    %317 = arith.addf %315, %316 : vector<8x128xf32>
    %318 = vector.broadcast %6 : vector<1x128xf32> to vector<8x128xf32>
    %319 = arith.addf %317, %318 : vector<8x128xf32>
    %320 = arith.negf %319 : vector<8x128xf32>
    %321 = math.exp %320 : vector<8x128xf32>
    %cst_60 = arith.constant 1.000000e+00 : f32
    %322 = vector.broadcast %cst_60 : f32 to vector<8x128xf32>
    %323 = arith.addf %322, %321 : vector<8x128xf32>
    %324 = arith.divf %322, %323 : vector<8x128xf32>
    %325 = math.tanh %319 : vector<8x128xf32>
    %326 = vector.extract_strided_slice %324 {offsets = [0, 0], sizes = [8, 32], strides = [1, 1]} : vector<8x128xf32> to vector<8x32xf32>
    %327 = vector.extract_strided_slice %324 {offsets = [0, 32], sizes = [8, 32], strides = [1, 1]} : vector<8x128xf32> to vector<8x32xf32>
    %328 = vector.extract_strided_slice %325 {offsets = [0, 64], sizes = [8, 32], strides = [1, 1]} : vector<8x128xf32> to vector<8x32xf32>
    %329 = vector.extract_strided_slice %324 {offsets = [0, 96], sizes = [8, 32], strides = [1, 1]} : vector<8x128xf32> to vector<8x32xf32>
    %330 = arith.mulf %327, %289 : vector<8x32xf32>
    %331 = arith.mulf %326, %328 : vector<8x32xf32>
    %332 = arith.addf %330, %331 : vector<8x32xf32>
    %333 = math.tanh %332 : vector<8x32xf32>
    %334 = arith.mulf %329, %333 : vector<8x32xf32>
    %335 = tpu.concatenate %334, %310 in 1 : vector<8x32xf32>, vector<8x32xf32> -> vector<8x64xf32>
    %cst_61 = arith.constant dense<0.000000e+00> : vector<8x128xf32>
    %336 = tpu.matmul %335, %7, %cst_61 {dimension_numbers = #tpu.dot_dimension_numbers<[1], [0], [0], [1], [0, 0, 1, 1], [], []>} : vector<8x64xf32>, vector<64x128xf32>, vector<8x128xf32> -> vector<8x128xf32>
    %337 = vector.broadcast %8 : vector<1x128xf32> to vector<8x128xf32>
    %338 = arith.addf %336, %337 : vector<8x128xf32>
    %339 = arith.negf %338 : vector<8x128xf32>
    %340 = math.exp %339 : vector<8x128xf32>
    %cst_62 = arith.constant 1.000000e+00 : f32
    %341 = vector.broadcast %cst_62 : f32 to vector<8x128xf32>
    %342 = arith.addf %341, %340 : vector<8x128xf32>
    %343 = arith.divf %341, %342 : vector<8x128xf32>
    %344 = math.tanh %338 : vector<8x128xf32>
    %345 = vector.extract_strided_slice %343 {offsets = [0, 0], sizes = [8, 32], strides = [1, 1]} : vector<8x128xf32> to vector<8x32xf32>
    %346 = vector.extract_strided_slice %343 {offsets = [0, 32], sizes = [8, 32], strides = [1, 1]} : vector<8x128xf32> to vector<8x32xf32>
    %347 = vector.extract_strided_slice %344 {offsets = [0, 64], sizes = [8, 32], strides = [1, 1]} : vector<8x128xf32> to vector<8x32xf32>
    %348 = vector.extract_strided_slice %343 {offsets = [0, 96], sizes = [8, 32], strides = [1, 1]} : vector<8x128xf32> to vector<8x32xf32>
    %349 = arith.mulf %346, %308 : vector<8x32xf32>
    %350 = arith.mulf %345, %347 : vector<8x32xf32>
    %351 = arith.addf %349, %350 : vector<8x32xf32>
    %352 = math.tanh %351 : vector<8x32xf32>
    %353 = arith.mulf %348, %352 : vector<8x32xf32>
    %c7 = arith.constant 7 : index
    %c0_63 = arith.constant 0 : index
    %c0_64 = arith.constant 0 : index
    %354 = vector.load %arg9[%c7, %c0_63, %c0_64] : memref<8x8x32xf32, #tpu.memory_space<vmem>>, vector<1x8x32xf32>
    %355 = vector.shape_cast %354 : vector<1x8x32xf32> to vector<8x32xf32>
    %356 = vector.shape_cast %353 : vector<8x32xf32> to vector<1x8x32xf32>
    tpu.vector_store %arg9[%c7, %c0_63, %c0_64], %356 {strides = array<i32>} : memref<8x8x32xf32, #tpu.memory_space<vmem>>, vector<1x8x32xf32>,
    %c0_65 = arith.constant 0 : index
    %c0_66 = arith.constant 0 : index
    %c0_67 = arith.constant 0 : index
    %357 = vector.load %arg9[%c0_65, %c0_66, %c0_67] : memref<8x8x32xf32, #tpu.memory_space<vmem>>, vector<8x8x32xf32>
    %358 = vector.shape_cast %357 : vector<8x8x32xf32> to vector<64x32xf32>
    %c0_68 = arith.constant 0 : index
    %c0_69 = arith.constant 0 : index
    %359 = vector.load %arg6[%c0_68, %c0_69] : memref<32x128xf32, #tpu.memory_space<vmem>>, vector<32x128xf32>
    %cst_70 = arith.constant dense<0.000000e+00> : vector<64x128xf32>
    %360 = tpu.matmul %358, %359, %cst_70 {dimension_numbers = #tpu.dot_dimension_numbers<[1], [0], [0], [1], [0, 0, 1, 1], [], []>} : vector<64x32xf32>, vector<32x128xf32>, vector<64x128xf32> -> vector<64x128xf32>
    %c0_71 = arith.constant 0 : index
    %c0_72 = arith.constant 0 : index
    %361 = vector.load %arg7[%c0_71, %c0_72] : memref<1x128xf32, #tpu.memory_space<vmem>>, vector<1x128xf32>
    %362 = vector.broadcast %361 : vector<1x128xf32> to vector<64x128xf32>
    %363 = arith.addf %360, %362 : vector<64x128xf32>
    %364 = vector.shape_cast %363 : vector<64x128xf32> to vector<8x8x128xf32>
    %c0_73 = arith.constant 0 : index
    %c0_74 = arith.constant 0 : index
    %c0_75 = arith.constant 0 : index
    %365 = vector.load %arg8[%c0_73, %c0_74, %c0_75] : memref<8x8x128xf32, #tpu.memory_space<vmem>>, vector<8x8x128xf32>
    tpu.vector_store %arg8[%c0_73, %c0_74, %c0_75], %364 {strides = array<i32>} : memref<8x8x128xf32, #tpu.memory_space<vmem>>, vector<8x8x128xf32>,
    return
  }
}

</mosaic_0001>

<bundles_post_ra>
// kernel: seq2seq_forward.1
= control target key start
LH: loop header
LB: loop body
LE: loop exit
PB: predicated region body
PF: predicated region fallthrough
CT: control target
= control target key end

     0   :  { %vm39_vm0 = vcmask 130048   ;;  %v1488_v7 = vmov 0.0   ;;  %s1489_s19 = smov 64   ;;  %s1490_s20 = smov 32   ;;  %vm119_vm5 = vcmask 261120   ;;  %vm193_vm6 = vcmask 523264   ;;  %s1995_s2 = inlined_call_operand.vmem [shape: f32[32,128], index: 2, kind: input, shape index: {}]   ;;  %s1996_s1 = inlined_call_operand.vmem [shape: f32[16,128], index: 1, kind: input, shape index: {}]   ;;  %s1997_s0 = inlined_call_operand.vmem [shape: f32[8,8,16], index: 0, kind: input, shape index: {}]   ;;  %s1998_s3 = inlined_call_operand.vmem [shape: f32[1,128], index: 3, kind: input, shape index: {}]   ;;  %s1999_s4 = inlined_call_operand.vmem [shape: f32[64,128], index: 4, kind: input, shape index: {}]   ;;  %s2000_s5 = inlined_call_operand.vmem [shape: f32[1,128], index: 5, kind: input, shape index: {}]   ;;  %s2001_s6 = inlined_call_operand.vmem [shape: f32[32,128], index: 6, kind: input, shape index: {}]   ;;  %s2002_s7 = inlined_call_operand.vmem [shape: f32[1,128], index: 7, kind: input, shape index: {}]   ;;  %s2003_s8 = inlined_call_operand.vmem [shape: f32[8,8,128], index: 8, kind: output, shape index: {}]  }
   0x1   :  { %v1539_v0 = vld [vmem:[%s1995_s2 + $0x18] sm:$0xff]  ;;  %v1544_v1 = vld [vmem:[%s1995_s2 + $0x10] sm:$0xff]  ;;  %v38_v2 = vld [vmem:[%s1996_s1 + $0x8] sm:$0xff] }
   0x2   :  { %135 = vmatpush.msra.mxu1 %v1539_v0  ;;  %78 = vmatpush.msra.mxu0 %v38_v2  ;;  %v37_v3 = vld [vmem:[%s1996_s1] sm:$0xff]  ;;  %v1556_v4 = vld [vmem:[%s1995_s2 + $0x8] sm:$0xff]  ;;  %v1593_v33 = vld [vmem:[%s1999_s4 + $0x38] sm:$0xff] }
   0x3   :  { %v29_v5 = vld [vmem:[%s1997_s0] sm:$0xff]  ;;  %273 = vmatpush.msra.mxu3 %v1539_v0  ;;  %v1598_v34 = vld [vmem:[%s1999_s4 + $0x30] sm:$0xff]  ;;  %205 = vmatpush.msra.mxu2 %v1593_v33  ;;  %v1605_v35 = vld [vmem:[%s1999_s4 + $0x28] sm:$0xff] }
   0x4   :  { %136 = vmatpush.msra.mxu1 %v1544_v1  ;;  %79 = vmatpush.msra.mxu0 %v37_v3  ;;  %v1566_v6 = vld [vmem:[%s1995_s2] sm:$0xff]  ;;  %v1621_v37 = vld [vmem:[%s1999_s4 + $0x18] sm:$0xff]  ;;  %v1629_v38 = vld [vmem:[%s1999_s4 + $0x10] sm:$0xff] }
   0x5   :  { %1297 = vmatmul.msk.f32.vlgmr.msra.gmra.mxu0 %vm39_vm0, %v29_v5  ;;  %274 = vmatpush.msra.mxu3 %v1544_v1  ;;  %v1581_v9 = vld [vmem:[%s1998_s3] ss:$0 sm:$0xff]  ;;  %v1637_v39 = vld [vmem:[%s1999_s4 + $0x8] sm:$0xff] }
   0x6   :  { %137 = vmatpush.msra.mxu1 %v1556_v4  ;;  %1149 = vmatpush.msrb.mxu0 %v1593_v33  ;;  %v1613_v36 = vld [vmem:[%s1999_s4 + $0x20] sm:$0xff]  ;;  %v30_v43 = vld [vmem:[%s1997_s0 + $0x8] sm:$0xff] }
   0x7   :  { %275 = vmatpush.msra.mxu3 %v1556_v4  ;;  %206 = vmatpush.msra.mxu2 %v1598_v34  ;;  %v1650_v42 = vld [vmem:[%s1999_s4] sm:$0xff] }
   0x8   :  { %138 = vmatpush.msra.mxu1 %v1566_v6  ;;  %1150 = vmatpush.msrb.mxu0 %v1598_v34  ;;  %v1694_v50 = vld [vmem:[%s2000_s5] ss:$0 sm:$0xff] }
   0x9   :  { %139 = vmatmul.f32.vlgmr.msra.gmra.mxu1 %v1488_v7  ;;  %276 = vmatpush.msra.mxu3 %v1566_v6 }
   0xa   :  { %339 = vmatpush.msrb.mxu1 %v1593_v33  ;;  %207 = vmatpush.msra.mxu2 %v1605_v35 }
   0xb   :  { %408 = vmatpush.msrb.mxu3 %v1539_v0  ;;  %1151 = vmatpush.msrb.mxu0 %v1605_v35 }
   0xc   :  { %340 = vmatpush.msrb.mxu1 %v1598_v34  ;;  %208 = vmatpush.msra.mxu2 %v1613_v36 }
   0xd   :  { %409 = vmatpush.msrb.mxu3 %v1544_v1  ;;  %1152 = vmatpush.msrb.mxu0 %v1613_v36 }
   0xe   :  { %341 = vmatpush.msrb.mxu1 %v1605_v35  ;;  %209 = vmatpush.msra.mxu2 %v1621_v37 }
   0xf   :  { %410 = vmatpush.msrb.mxu3 %v1556_v4  ;;  %1153 = vmatpush.msrb.mxu0 %v1621_v37 }
  0x10   :  { %342 = vmatpush.msrb.mxu1 %v1613_v36  ;;  %210 = vmatpush.msra.mxu2 %v1629_v38 }
  0x11   :  { %411 = vmatpush.msrb.mxu3 %v1566_v6  ;;  %1154 = vmatpush.msrb.mxu0 %v1629_v38 }
  0x12   :  { %343 = vmatpush.msrb.mxu1 %v1621_v37  ;;  %211 = vmatpush.msra.mxu2 %v1637_v39 }
  0x13   :  { %1155 = vmatpush.msrb.mxu0 %v1637_v39 }
  0x14   :  { %344 = vmatpush.msrb.mxu1 %v1629_v38  ;;  %212 = vmatpush.msra.mxu2 %v1650_v42 }
  0x15   :  { %1298 = vmatmul.msk.f32.gmra.mxu0 %vm39_vm0, %v30_v43 }
  0x16   :  { %345 = vmatpush.msrb.mxu1 %v1637_v39  ;;  %474 = vmatpush.msrb.mxu2 %v1593_v33 }
  0x17   :  { %1156 = vmatpush.msrb.mxu0 %v1650_v42 }
  0x18   :  { %346 = vmatpush.msrb.mxu1 %v1650_v42  ;;  %475 = vmatpush.msrb.mxu2 %v1598_v34 }
  0x1a   :  { %609 = vmatpush.msra.mxu1 %v1593_v33  ;;  %476 = vmatpush.msrb.mxu2 %v1605_v35 }
  0x1c   :  { %610 = vmatpush.msra.mxu1 %v1598_v34  ;;  %477 = vmatpush.msrb.mxu2 %v1613_v36 }
  0x1e   :  { %611 = vmatpush.msra.mxu1 %v1605_v35  ;;  %478 = vmatpush.msrb.mxu2 %v1621_v37 }
  0x20   :  { %612 = vmatpush.msra.mxu1 %v1613_v36  ;;  %479 = vmatpush.msrb.mxu2 %v1629_v38 }
  0x22   :  { %613 = vmatpush.msra.mxu1 %v1621_v37  ;;  %480 = vmatpush.msrb.mxu2 %v1637_v39 }
  0x24   :  { %614 = vmatpush.msra.mxu1 %v1629_v38  ;;  %481 = vmatpush.msrb.mxu2 %v1650_v42 }
  0x26   :  { %615 = vmatpush.msra.mxu1 %v1637_v39 }
  0x28   :  { %616 = vmatpush.msra.mxu1 %v1650_v42 }
  0x82   :  { %v81_v8 = vpop.f32.mrf.mxu0 }
  0x86   :  { %v140_v10 = vpop.f32.mrf.mxu1 }
  0x87   :  { %v143_v11 = vadd.f32 %v140_v10, %v81_v8 }
  0x89   :  { %v147_v12 = vadd.f32 %v1581_v9, %v143_v11 }
  0x8b   :  { %1358 = vtanh.f32 %v147_v12  ;;  %v1305_v14 = vmul.f32 -1.442695, %v147_v12 }
  0x8d   :  { %1360 = vpow2.f32 %v1305_v14 }
  0x91   :  { %v1359_v13 = vpop.eup %1358 }
  0x92   :  { %170 = vrot.lane.b32.xlu0 %v1359_v13, %s1489_s19  ;;  %v84_v46 = vpop.f32.mrf.mxu0 }
  0x93   :  { %v1361_v15 = vpop.eup %1360 }
  0x94   :  { %v151_v16 = vadd.f32 1.0, %v1361_v15 }
  0x96   :  { %1362 = vrcp.f32 %v151_v16  ;;  %v163_v22 = vand.u32 2147483648, %v151_v16  ;;  %vm157_vm2 = vweird.f32 %v151_v16  ;;  %v161_v23 = vand.u32 2147483647, %v151_v16 }
  0x98   :  { %v164_v25 = vor.u32 1.1754944e-38, %v163_v22  ;;  %vm162_vm4 = vcmp.eq.f32.partialorder %v161_v23, 8.507059e+37 }
  0x9c   :  { %v1363_v17 = vpop.eup %1362 }
  0x9d   :  { %v153_v18 = vmul.f32 %v1363_v17, %v151_v16  ;;  %vm158_vm1 = vweird.f32 %v1363_v17 }
  0x9e   :  { %vm159_vm3 = vmor %vm157_vm2, %vm158_vm1 }
  0x9f   :  { %v154_v19 = vsub.f32 1.0, %v153_v18 }
  0xa1   :  { %v155_v20 = vmul.f32 %v1363_v17, %v154_v19 }
  0xa3   :  { %v156_v21 = vadd.f32 %v1363_v17, %v155_v20 }
  0xa5   :  { %v160_v24 = vsel %vm159_vm3, %v1363_v17, %v156_v21 }
  0xa6   :  { %v165_v27 = vsel %vm162_vm4, %v164_v25, %v160_v24 }
  0xa7   :  { %v168_v29 = vmul.f32 0.0, %v165_v27 }
 0x104   :  { %v171_v26 = vpop.permute.xlu0 %170 }
 0x105   :  { %v173_v28 = vmul.f32 %v171_v26, %v165_v27 }
 0x107   :  { %175 = vrot.lane.b32.xlu0 %v173_v28, %s1490_s20 }
 0x179   :  { %v176_v30 = vpop.permute.xlu0 %175 }
 0x17a   :  { %v1586_v31 = vadd.f32 %v176_v30, %v168_v29 }
 0x17c   :  { %1364 = vtanh.f32 %v1586_v31 }
 0x182   :  { %v1365_v32 = vpop.eup %1364 }
 0x183   :  { %181 = vrot.lane.b32.xlu1 %v1365_v32, %s1489_s19 }
 0x1f5   :  { %v182_v40 = vpop.permute.xlu1 %181 }
 0x1f6   :  { %v184_v41 = vmul.f32 %v182_v40, %v165_v27 }
 0x1f8   :  { %186 = vrot.lane.b32.xlu1 %v184_v41, %s1490_s20 }
 0x26a   :  { %v187_v44 = vpop.permute.xlu1 %186 }
 0x26b   :  { %1308 = vmatmul.msk.f32.vlgmr.msra.gmra.mxu3 %vm119_vm5, %v187_v44  ;;  %v189_v45 = vsel %vm119_vm5, %v187_v44, 0.0 }
 0x26c   :  { %1306 = vmatmul.msk.f32.vlgmr.msra.gmra.mxu2 %vm193_vm6, %v189_v45  ;;  %543 = vmatpush.msra.mxu3 %v1539_v0 }
 0x26d   :  { %744 = vmatpush.msra.mxu2 %v1593_v33 }
 0x26e   :  { %544 = vmatpush.msra.mxu3 %v1544_v1 }
 0x26f   :  { %745 = vmatpush.msra.mxu2 %v1598_v34 }
 0x270   :  { %545 = vmatpush.msra.mxu3 %v1556_v4 }
 0x271   :  { %746 = vmatpush.msra.mxu2 %v1605_v35 }
 0x272   :  { %546 = vmatpush.msra.mxu3 %v1566_v6 }
 0x273   :  { %747 = vmatpush.msra.mxu2 %v1613_v36 }
 0x275   :  { %748 = vmatpush.msra.mxu2 %v1621_v37 }
 0x277   :  { %749 = vmatpush.msra.mxu2 %v1629_v38 }
 0x279   :  { %750 = vmatpush.msra.mxu2 %v1637_v39 }
 0x27b   :  { %751 = vmatpush.msra.mxu2 %v1650_v42 }
 0x2ee   :  { %v278_v47 = vpop.f32.mrf.mxu3 }
 0x2ef   :  { %v281_v48 = vadd.f32 %v278_v47, %v84_v46  ;;  %v214_v51 = vpop.f32.mrf.mxu2  ;;  %v31_v46 = vld [vmem:[%s1997_s0 + $0x10] sm:$0xff] }
 0x2f0   :  { %v215_v52 = vadd.f32 %v1694_v50, %v214_v51  ;;  %1299 = vmatmul.msk.f32.gmra.mxu0 %vm39_vm0, %v31_v46 }
 0x2f1   :  { %v282_v49 = vadd.f32 %v1581_v9, %v281_v48 }
 0x2f2   :  { %v1307_v56 = vmul.f32 -1.442695, %v215_v52 }
 0x2f3   :  { %1366 = vtanh.f32 %v282_v49  ;;  %v1309_v55 = vmul.f32 -1.442695, %v282_v49 }
 0x2f4   :  { %1368 = vtanh.f32 %v215_v52 }
 0x2f5   :  { %1370 = vpow2.f32 %v1309_v55 }
 0x2f6   :  { %1372 = vpow2.f32 %v1307_v56 }
 0x2f9   :  { %v1367_v53 = vpop.eup %1366 }
 0x2fa   :  { %305 = vrot.lane.b32.xlu2 %v1367_v53, %s1489_s19  ;;  %v1369_v54 = vpop.eup %1368 }
 0x2fb   :  { %v1371_v57 = vpop.eup %1370 }
 0x2fc   :  { %v286_v58 = vadd.f32 1.0, %v1371_v57  ;;  %v1373_v59 = vpop.eup %1372 }
 0x2fd   :  { %v220_v60 = vadd.f32 1.0, %v1373_v59 }
 0x2fe   :  { %1374 = vrcp.f32 %v286_v58  ;;  %v298_v10 = vand.u32 2147483648, %v286_v58  ;;  %vm292_vm8 = vweird.f32 %v286_v58  ;;  %v296_v11 = vand.u32 2147483647, %v286_v58 }
 0x2ff   :  { %1376 = vrcp.f32 %v220_v60  ;;  %v232_v19 = vand.u32 2147483648, %v220_v60  ;;  %vm226_vm12 = vweird.f32 %v220_v60  ;;  %v230_v20 = vand.u32 2147483647, %v220_v60 }
 0x300   :  { %v299_v14 = vor.u32 1.1754944e-38, %v298_v10  ;;  %vm297_vm10 = vcmp.eq.f32.partialorder %v296_v11, 8.507059e+37 }
 0x301   :  { %v233_v22 = vor.u32 1.1754944e-38, %v232_v19  ;;  %vm231_vm14 = vcmp.eq.f32.partialorder %v230_v20, 8.507059e+37 }
 0x302   :  { %239 = vrot.lane.b32.xlu2 %v1369_v54, %s1489_s19 }
 0x304   :  { %v1375_v61 = vpop.eup %1374 }
 0x305   :  { %v288_v62 = vmul.f32 %v1375_v61, %v286_v58  ;;  %v1377_v2 = vpop.eup %1376  ;;  %vm293_vm7 = vweird.f32 %v1375_v61 }
 0x306   :  { %v222_v5 = vmul.f32 %v1377_v2, %v220_v60  ;;  %vm294_vm9 = vmor %vm292_vm8, %vm293_vm7  ;;  %vm227_vm11 = vweird.f32 %v1377_v2 }
 0x307   :  { %v289_v63 = vsub.f32 1.0, %v288_v62  ;;  %vm228_vm13 = vmor %vm226_vm12, %vm227_vm11 }
 0x308   :  { %v223_v8 = vsub.f32 1.0, %v222_v5 }
 0x309   :  { %v290_v3 = vmul.f32 %v1375_v61, %v289_v63 }
 0x30a   :  { %v224_v13 = vmul.f32 %v1377_v2, %v223_v8 }
 0x30b   :  { %v291_v7 = vadd.f32 %v1375_v61, %v290_v3 }
 0x30c   :  { %v225_v18 = vadd.f32 %v1377_v2, %v224_v13 }
 0x30d   :  { %v295_v12 = vsel %vm294_vm9, %v1375_v61, %v291_v7 }
 0x30e   :  { %v300_v16 = vsel %vm297_vm10, %v299_v14, %v295_v12  ;;  %v229_v21 = vsel %vm228_vm13, %v1377_v2, %v225_v18 }
 0x30f   :  { %v234_v23 = vsel %vm231_vm14, %v233_v22, %v229_v21  ;;  %v303_v26 = vmul.f32 %v300_v16, %v1586_v31 }
 0x310   :  { %v237_v29 = vmul.f32 0.0, %v234_v23 }
 0x354   :  { %v306_v15 = vpop.permute.xlu2 %305 }
 0x355   :  { %v308_v17 = vmul.f32 %v306_v15, %v300_v16 }
 0x357   :  { %310 = vrot.lane.b32.xlu0 %v308_v17, %s1490_s20 }
 0x35c   :  { %v240_v24 = vpop.permute.xlu2 %239 }
 0x35d   :  { %v242_v25 = vmul.f32 %v240_v24, %v234_v23 }
 0x35f   :  { %244 = vrot.lane.b32.xlu1 %v242_v25, %s1490_s20 }
 0x36d   :  { %v87_v51 = vpop.f32.mrf.mxu0 }
 0x3c9   :  { %v311_v27 = vpop.permute.xlu0 %310 }
 0x3ca   :  { %v1702_v28 = vadd.f32 %v311_v27, %v303_v26 }
 0x3cc   :  { %1378 = vtanh.f32 %v1702_v28 }
 0x3d1   :  { %v245_v30 = vpop.permute.xlu1 %244 }
 0x3d2   :  { %v1379_v32 = vpop.eup %1378  ;;  %v1705_v40 = vadd.f32 %v245_v30, %v237_v29 }
 0x3d3   :  { %316 = vrot.lane.b32.xlu2 %v1379_v32, %s1489_s19 }
 0x3d4   :  { %1380 = vtanh.f32 %v1705_v40 }
 0x3da   :  { %v1381_v41 = vpop.eup %1380 }
 0x3db   :  { %250 = vrot.lane.b32.xlu0 %v1381_v41, %s1489_s19 }
 0x42d   :  { %v317_v43 = vpop.permute.xlu2 %316 }
 0x42e   :  { %v319_v44 = vmul.f32 %v317_v43, %v300_v16 }
 0x430   :  { %321 = vrot.lane.b32.xlu1 %v319_v44, %s1490_s20 }
 0x44d   :  { %v251_v31 = vpop.permute.xlu0 %250 }
 0x44e   :  { %v1711_v45 = vmul.f32 %v251_v31, %v234_v23 }
 0x450   :  { %324 = vrot.lane.b32.xlu2 %v1711_v45, %s1489_s19 }
 0x4a2   :  { %v322_v47 = vpop.permute.xlu1 %321 }
 0x4a3   :  { %1312 = vmatmul.msk.f32.vlgmr.msrb.gmra.mxu3 %vm119_vm5, %v322_v47 }
 0x4a4   :  { %678 = vmatpush.msrb.mxu3 %v1539_v0 }
 0x4a6   :  { %679 = vmatpush.msrb.mxu3 %v1544_v1 }
 0x4a8   :  { %680 = vmatpush.msrb.mxu3 %v1556_v4 }
 0x4aa   :  { %v325_v48 = vpop.permute.xlu2 %324  ;;  %681 = vmatpush.msrb.mxu3 %v1566_v6 }
 0x4ab   :  { %v327_v49 = vsel %vm119_vm5, %v322_v47, %v325_v48 }
 0x4ac   :  { %1310 = vmatmul.msk.f32.vlgmr.msrb.gmra.mxu1 %vm193_vm6, %v327_v49 }
 0x4ad   :  { %879 = vmatpush.msrb.mxu1 %v1593_v33 }
 0x4af   :  { %880 = vmatpush.msrb.mxu1 %v1598_v34 }
 0x4b1   :  { %881 = vmatpush.msrb.mxu1 %v1605_v35 }
 0x4b3   :  { %882 = vmatpush.msrb.mxu1 %v1613_v36 }
 0x4b5   :  { %883 = vmatpush.msrb.mxu1 %v1621_v37 }
 0x4b7   :  { %884 = vmatpush.msrb.mxu1 %v1629_v38 }
 0x4b9   :  { %885 = vmatpush.msrb.mxu1 %v1637_v39 }
 0x4bb   :  { %886 = vmatpush.msrb.mxu1 %v1650_v42 }
 0x526   :  { %v413_v52 = vpop.f32.mrf.mxu3 }
 0x527   :  { %v416_v53 = vadd.f32 %v413_v52, %v87_v51 }
 0x529   :  { %v417_v54 = vadd.f32 %v1581_v9, %v416_v53  ;;  %v348_v55 = vpop.f32.mrf.mxu1 }
 0x52a   :  { %v349_v56 = vadd.f32 %v1694_v50, %v348_v55 }
 0x52b   :  { %1382 = vtanh.f32 %v417_v54  ;;  %v1313_v59 = vmul.f32 -1.442695, %v417_v54 }
 0x52c   :  { %1384 = vtanh.f32 %v349_v56  ;;  %v1311_v60 = vmul.f32 -1.442695, %v349_v56 }
 0x52d   :  { %1386 = vpow2.f32 %v1313_v59 }
 0x52e   :  { %1388 = vpow2.f32 %v1311_v60 }
 0x531   :  { %v1383_v57 = vpop.eup %1382 }
 0x532   :  { %v1385_v58 = vpop.eup %1384  ;;  %440 = vrot.lane.b32.xlu0 %v1383_v57, %s1489_s19 }
 0x533   :  { %373 = vrot.lane.b32.xlu1 %v1385_v58, %s1489_s19  ;;  %v1387_v61 = vpop.eup %1386 }
 0x534   :  { %v1389_v62 = vpop.eup %1388  ;;  %v421_v63 = vadd.f32 1.0, %v1387_v61 }
 0x535   :  { %v354_v2 = vadd.f32 1.0, %v1389_v62 }
 0x536   :  { %1390 = vrcp.f32 %v421_v63  ;;  %v433_v15 = vand.u32 2147483648, %v421_v63  ;;  %vm427_vm2 = vweird.f32 %v421_v63  ;;  %v431_v17 = vand.u32 2147483647, %v421_v63 }
 0x537   :  { %1392 = vrcp.f32 %v354_v2  ;;  %v366_v18 = vand.u32 2147483648, %v354_v2  ;;  %vm360_vm4 = vweird.f32 %v354_v2  ;;  %v364_v19 = vand.u32 2147483647, %v354_v2 }
 0x538   :  { %v434_v21 = vor.u32 1.1754944e-38, %v433_v15  ;;  %vm432_vm8 = vcmp.eq.f32.partialorder %v431_v17, 8.507059e+37 }
 0x539   :  { %v367_v23 = vor.u32 1.1754944e-38, %v366_v18  ;;  %vm365_vm9 = vcmp.eq.f32.partialorder %v364_v19, 8.507059e+37 }
 0x53c   :  { %v1391_v3 = vpop.eup %1390 }
 0x53d   :  { %v1393_v5 = vpop.eup %1392  ;;  %v423_v7 = vmul.f32 %v1391_v3, %v421_v63  ;;  %vm428_vm15 = vweird.f32 %v1391_v3 }
 0x53e   :  { %v356_v8 = vmul.f32 %v1393_v5, %v354_v2  ;;  %vm361_vm1 = vweird.f32 %v1393_v5  ;;  %vm429_vm3 = vmor %vm427_vm2, %vm428_vm15 }
 0x53f   :  { %v424_v10 = vsub.f32 1.0, %v423_v7  ;;  %vm362_vm7 = vmor %vm360_vm4, %vm361_vm1 }
 0x540   :  { %v357_v11 = vsub.f32 1.0, %v356_v8 }
 0x541   :  { %v425_v12 = vmul.f32 %v1391_v3, %v424_v10 }
 0x542   :  { %v358_v13 = vmul.f32 %v1393_v5, %v357_v11 }
 0x543   :  { %v426_v14 = vadd.f32 %v1391_v3, %v425_v12 }
 0x544   :  { %v359_v16 = vadd.f32 %v1393_v5, %v358_v13 }
 0x545   :  { %v430_v20 = vsel %vm429_vm3, %v1391_v3, %v426_v14 }
 0x546   :  { %v363_v22 = vsel %vm362_vm7, %v1393_v5, %v359_v16  ;;  %v435_v25 = vsel %vm432_vm8, %v434_v21, %v430_v20 }
 0x547   :  { %v368_v29 = vsel %vm365_vm9, %v367_v23, %v363_v22  ;;  %v438_v32 = vmul.f32 %v435_v25, %v1702_v28 }
 0x548   :  { %v371_v31 = vmul.f32 %v368_v29, %v1705_v40  ;;  %v32_v40 = vld [vmem:[%s1997_s0 + $0x18] sm:$0xff] }
 0x549   :  { %1300 = vmatmul.msk.f32.gmra.mxu0 %vm39_vm0, %v32_v40 }
 0x5a4   :  { %v441_v24 = vpop.permute.xlu0 %440 }
 0x5a5   :  { %v443_v26 = vmul.f32 %v441_v24, %v435_v25  ;;  %v374_v27 = vpop.permute.xlu1 %373 }
 0x5a6   :  { %v376_v30 = vmul.f32 %v374_v27, %v368_v29 }
 0x5a7   :  { %445 = vrot.lane.b32.xlu2 %v443_v26, %s1490_s20 }
 0x5a8   :  { %378 = vrot.lane.b32.xlu0 %v376_v30, %s1490_s20 }
 0x5c6   :  { %v90_v56 = vpop.f32.mrf.mxu0 }
 0x601   :  { %v446_v41 = vpop.permute.xlu2 %445 }
 0x602   :  { %v1741_v43 = vadd.f32 %v446_v41, %v438_v32 }
 0x604   :  { %1394 = vtanh.f32 %v1741_v43 }
 0x60a   :  { %v1395_v44 = vpop.eup %1394 }
 0x60b   :  { %451 = vrot.lane.b32.xlu1 %v1395_v44, %s1489_s19 }
 0x61a   :  { %v379_v46 = vpop.permute.xlu0 %378 }
 0x61b   :  { %v1746_v47 = vadd.f32 %v379_v46, %v371_v31 }
 0x61d   :  { %1396 = vtanh.f32 %v1746_v47 }
 0x623   :  { %v1397_v48 = vpop.eup %1396 }
 0x624   :  { %384 = vrot.lane.b32.xlu2 %v1397_v48, %s1489_s19 }
 0x67d   :  { %v452_v49 = vpop.permute.xlu1 %451 }
 0x67e   :  { %v454_v28 = vmul.f32 %v452_v49, %v435_v25  ;;  %v385_v51 = vpop.permute.xlu2 %384 }
 0x67f   :  { %v1750_v52 = vmul.f32 %v385_v51, %v368_v29 }
 0x680   :  { %456 = vrot.lane.b32.xlu0 %v454_v28, %s1490_s20  ;;  %v33_v28 = vld [vmem:[%s1997_s0 + $0x20] sm:$0xff] }
 0x681   :  { %459 = vrot.lane.b32.xlu1 %v1750_v52, %s1489_s19  ;;  %1301 = vmatmul.msk.f32.gmra.mxu0 %vm39_vm0, %v33_v28 }
 0x6f2   :  { %v457_v53 = vpop.permute.xlu0 %456 }
 0x6f3   :  { %1316 = vmatmul.msk.f32.vlgmr.msra.gmra.mxu3 %vm119_vm5, %v457_v53  ;;  %v460_v54 = vpop.permute.xlu1 %459 }
 0x6f4   :  { %v462_v55 = vsel %vm119_vm5, %v457_v53, %v460_v54  ;;  %813 = vmatpush.msra.mxu3 %v1539_v0 }
 0x6f5   :  { %1314 = vmatmul.msk.f32.vlgmr.msrb.gmra.mxu2 %vm193_vm6, %v462_v55 }
 0x6f6   :  { %814 = vmatpush.msra.mxu3 %v1544_v1  ;;  %1014 = vmatpush.msrb.mxu2 %v1593_v33 }
 0x6f8   :  { %815 = vmatpush.msra.mxu3 %v1556_v4  ;;  %1015 = vmatpush.msrb.mxu2 %v1598_v34 }
 0x6fa   :  { %816 = vmatpush.msra.mxu3 %v1566_v6  ;;  %1016 = vmatpush.msrb.mxu2 %v1605_v35 }
 0x6fc   :  { %1017 = vmatpush.msrb.mxu2 %v1613_v36 }
 0x6fe   :  { %1018 = vmatpush.msrb.mxu2 %v1621_v37  ;;  %v93_v54 = vpop.f32.mrf.mxu0 }
 0x700   :  { %1019 = vmatpush.msrb.mxu2 %v1629_v38 }
 0x702   :  { %1020 = vmatpush.msrb.mxu2 %v1637_v39 }
 0x704   :  { %1021 = vmatpush.msrb.mxu2 %v1650_v42 }
 0x776   :  { %v548_v33 = vpop.f32.mrf.mxu3 }
 0x777   :  { %v551_v57 = vadd.f32 %v548_v33, %v90_v56 }
 0x778   :  { %v483_v58 = vpop.f32.mrf.mxu2 }
 0x779   :  { %v552_v34 = vadd.f32 %v1581_v9, %v551_v57  ;;  %v484_v59 = vadd.f32 %v1694_v50, %v483_v58 }
 0x77b   :  { %1398 = vtanh.f32 %v552_v34  ;;  %v1317_v37 = vmul.f32 -1.442695, %v552_v34  ;;  %v1315_v60 = vmul.f32 -1.442695, %v484_v59 }
 0x77c   :  { %1400 = vtanh.f32 %v484_v59 }
 0x77d   :  { %1402 = vpow2.f32 %v1317_v37 }
 0x781   :  { %v1399_v35 = vpop.eup %1398 }
 0x782   :  { %v1401_v36 = vpop.eup %1400  ;;  %575 = vrot.lane.b32.xlu2 %v1399_v35, %s1489_s19 }
 0x783   :  { %508 = vrot.lane.b32.xlu0 %v1401_v36, %s1489_s19  ;;  %v1403_v38 = vpop.eup %1402 }
 0x784   :  { %v556_v39 = vadd.f32 1.0, %v1403_v38 }
 0x786   :  { %1404 = vrcp.f32 %v556_v39  ;;  %v568_v7 = vand.u32 2147483648, %v556_v39  ;;  %vm562_vm11 = vweird.f32 %v556_v39  ;;  %v566_v8 = vand.u32 2147483647, %v556_v39 }
 0x787   :  { %1406 = vpow2.f32 %v1315_v60 }
 0x788   :  { %v569_v11 = vor.u32 1.1754944e-38, %v568_v7  ;;  %vm567_vm13 = vcmp.eq.f32.partialorder %v566_v8, 8.507059e+37 }
 0x78c   :  { %v1405_v42 = vpop.eup %1404 }
 0x78d   :  { %v558_v61 = vmul.f32 %v1405_v42, %v556_v39  ;;  %v1407_v2 = vpop.eup %1406  ;;  %vm563_vm10 = vweird.f32 %v1405_v42 }
 0x78e   :  { %v489_v3 = vadd.f32 1.0, %v1407_v2  ;;  %vm564_vm12 = vmor %vm562_vm11, %vm563_vm10 }
 0x78f   :  { %v559_v62 = vsub.f32 1.0, %v558_v61 }
 0x790   :  { %1408 = vrcp.f32 %v489_v3  ;;  %v501_v20 = vand.u32 2147483648, %v489_v3  ;;  %vm495_vm15 = vweird.f32 %v489_v3  ;;  %v499_v21 = vand.u32 2147483647, %v489_v3 }
 0x791   :  { %v560_v63 = vmul.f32 %v1405_v42, %v559_v62 }
 0x792   :  { %v502_v23 = vor.u32 1.1754944e-38, %v501_v20  ;;  %vm500_vm2 = vcmp.eq.f32.partialorder %v499_v21, 8.507059e+37 }
 0x793   :  { %v561_v5 = vadd.f32 %v1405_v42, %v560_v63 }
 0x795   :  { %v565_v10 = vsel %vm564_vm12, %v1405_v42, %v561_v5 }
 0x796   :  { %v570_v13 = vsel %vm567_vm13, %v569_v11, %v565_v10  ;;  %v1409_v15 = vpop.eup %1408 }
 0x797   :  { %v491_v16 = vmul.f32 %v1409_v15, %v489_v3  ;;  %vm496_vm14 = vweird.f32 %v1409_v15  ;;  %v573_v27 = vmul.f32 %v570_v13, %v1741_v43 }
 0x798   :  { %vm497_vm1 = vmor %vm495_vm15, %vm496_vm14 }
 0x799   :  { %v492_v17 = vsub.f32 1.0, %v491_v16 }
 0x79b   :  { %v493_v18 = vmul.f32 %v1409_v15, %v492_v17 }
 0x79d   :  { %v494_v19 = vadd.f32 %v1409_v15, %v493_v18 }
 0x79f   :  { %v498_v22 = vsel %vm497_vm1, %v1409_v15, %v494_v19 }
 0x7a0   :  { %v503_v25 = vsel %vm500_vm2, %v502_v23, %v498_v22 }
 0x7a1   :  { %v506_v29 = vmul.f32 %v503_v25, %v1746_v47 }
 0x7dc   :  { %v576_v12 = vpop.permute.xlu2 %575 }
 0x7dd   :  { %v578_v14 = vmul.f32 %v576_v12, %v570_v13 }
 0x7df   :  { %580 = vrot.lane.b32.xlu1 %v578_v14, %s1490_s20 }
 0x7f5   :  { %v509_v24 = vpop.permute.xlu0 %508 }
 0x7f6   :  { %v511_v26 = vmul.f32 %v509_v24, %v503_v25 }
 0x7f8   :  { %513 = vrot.lane.b32.xlu2 %v511_v26, %s1490_s20 }
 0x851   :  { %v581_v30 = vpop.permute.xlu1 %580 }
 0x852   :  { %v514_v32 = vpop.permute.xlu2 %513  ;;  %v1782_v41 = vadd.f32 %v581_v30, %v573_v27 }
 0x853   :  { %v1784_v44 = vadd.f32 %v514_v32, %v506_v29 }
 0x854   :  { %1410 = vtanh.f32 %v1782_v41 }
 0x855   :  { %1412 = vtanh.f32 %v1784_v44 }
 0x85a   :  { %v1411_v31 = vpop.eup %1410 }
 0x85b   :  { %v1413_v46 = vpop.eup %1412  ;;  %586 = vrot.lane.b32.xlu0 %v1411_v31, %s1489_s19 }
 0x85c   :  { %519 = vrot.lane.b32.xlu1 %v1413_v46, %s1489_s19 }
 0x8cd   :  { %v587_v48 = vpop.permute.xlu0 %586 }
 0x8ce   :  { %v520_v43 = vpop.permute.xlu1 %519  ;;  %v589_v49 = vmul.f32 %v587_v48, %v570_v13 }
 0x8cf   :  { %v1790_v47 = vmul.f32 %v520_v43, %v503_v25 }
 0x8d0   :  { %591 = vrot.lane.b32.xlu2 %v589_v49, %s1490_s20 }
 0x8d1   :  { %594 = vrot.lane.b32.xlu0 %v1790_v47, %s1489_s19 }
 0x92a   :  { %v592_v51 = vpop.permute.xlu2 %591 }
 0x92b   :  { %1320 = vmatmul.msk.f32.vlgmr.msrb.gmra.mxu3 %vm119_vm5, %v592_v51 }
 0x92c   :  { %948 = vmatpush.msrb.mxu3 %v1539_v0 }
 0x92e   :  { %949 = vmatpush.msrb.mxu3 %v1544_v1 }
 0x930   :  { %950 = vmatpush.msrb.mxu3 %v1556_v4 }
 0x932   :  { %951 = vmatpush.msrb.mxu3 %v1566_v6 }
 0x943   :  { %v595_v40 = vpop.permute.xlu0 %594 }
 0x944   :  { %v597_v53 = vsel %vm119_vm5, %v592_v51, %v595_v40 }
 0x945   :  { %1318 = vmatmul.msk.f32.vlgmr.msra.gmra.mxu1 %vm193_vm6, %v597_v53 }
 0x9ae   :  { %v683_v55 = vpop.f32.mrf.mxu3 }
 0x9af   :  { %v686_v56 = vadd.f32 %v683_v55, %v93_v54 }
 0x9b1   :  { %v687_v33 = vadd.f32 %v1581_v9, %v686_v56 }
 0x9b3   :  { %1414 = vtanh.f32 %v687_v33  ;;  %v1321_v36 = vmul.f32 -1.442695, %v687_v33 }
 0x9b9   :  { %v1415_v57 = vpop.eup %1414 }
 0x9ba   :  { %710 = vrot.lane.b32.xlu1 %v1415_v57, %s1489_s19 }
 0x9c2   :  { %v618_v58 = vpop.f32.mrf.mxu1 }
 0x9c3   :  { %v619_v34 = vadd.f32 %v1694_v50, %v618_v58 }
 0x9c5   :  { %1416 = vtanh.f32 %v619_v34  ;;  %v1319_v35 = vmul.f32 -1.442695, %v619_v34 }
 0x9c7   :  { %1418 = vpow2.f32 %v1319_v35 }
 0x9c8   :  { %1420 = vpow2.f32 %v1321_v36 }
 0x9cb   :  { %v1417_v59 = vpop.eup %1416 }
 0x9cc   :  { %643 = vrot.lane.b32.xlu2 %v1417_v59, %s1489_s19 }
 0x9cd   :  { %v1419_v37 = vpop.eup %1418 }
 0x9ce   :  { %v624_v38 = vadd.f32 1.0, %v1419_v37  ;;  %v1421_v39 = vpop.eup %1420 }
 0x9cf   :  { %v691_v42 = vadd.f32 1.0, %v1421_v39 }
 0x9d0   :  { %1422 = vrcp.f32 %v624_v38  ;;  %v636_v8 = vand.u32 2147483648, %v624_v38  ;;  %vm630_vm4 = vweird.f32 %v624_v38  ;;  %v634_v10 = vand.u32 2147483647, %v624_v38 }
 0x9d1   :  { %1424 = vrcp.f32 %v691_v42  ;;  %v703_v17 = vand.u32 2147483648, %v691_v42  ;;  %vm697_vm10 = vweird.f32 %v691_v42  ;;  %v701_v19 = vand.u32 2147483647, %v691_v42 }
 0x9d2   :  { %v637_v13 = vor.u32 1.1754944e-38, %v636_v8  ;;  %vm635_vm8 = vcmp.eq.f32.partialorder %v634_v10, 8.507059e+37 }
 0x9d3   :  { %v704_v21 = vor.u32 1.1754944e-38, %v703_v17  ;;  %vm702_vm12 = vcmp.eq.f32.partialorder %v701_v19, 8.507059e+37 }
 0x9d6   :  { %v1423_v60 = vpop.eup %1422 }
 0x9d7   :  { %v626_v61 = vmul.f32 %v1423_v60, %v624_v38  ;;  %v1425_v62 = vpop.eup %1424  ;;  %vm631_vm3 = vweird.f32 %v1423_v60 }
 0x9d8   :  { %v693_v2 = vmul.f32 %v1425_v62, %v691_v42  ;;  %vm632_vm7 = vmor %vm630_vm4, %vm631_vm3  ;;  %vm698_vm9 = vweird.f32 %v1425_v62 }
 0x9d9   :  { %v627_v63 = vsub.f32 1.0, %v626_v61  ;;  %vm699_vm11 = vmor %vm697_vm10, %vm698_vm9 }
 0x9da   :  { %v694_v5 = vsub.f32 1.0, %v693_v2 }
 0x9db   :  { %v628_v3 = vmul.f32 %v1423_v60, %v627_v63 }
 0x9dc   :  { %v695_v11 = vmul.f32 %v1425_v62, %v694_v5 }
 0x9dd   :  { %v629_v7 = vadd.f32 %v1423_v60, %v628_v3 }
 0x9de   :  { %v696_v14 = vadd.f32 %v1425_v62, %v695_v11 }
 0x9df   :  { %v633_v12 = vsel %vm632_vm7, %v1423_v60, %v629_v7 }
 0x9e0   :  { %v638_v16 = vsel %vm635_vm8, %v637_v13, %v633_v12  ;;  %v700_v20 = vsel %vm699_vm11, %v1425_v62, %v696_v14 }
 0x9e1   :  { %v705_v23 = vsel %vm702_vm12, %v704_v21, %v700_v20  ;;  %v641_v25 = vmul.f32 %v638_v16, %v1784_v44 }
 0x9e2   :  { %v708_v29 = vmul.f32 %v705_v23, %v1782_v41  ;;  %v34_v41 = vld [vmem:[%s1997_s0 + $0x28] sm:$0xff] }
 0x9e3   :  { %1302 = vmatmul.msk.f32.gmra.mxu0 %vm39_vm0, %v34_v41 }
 0xa26   :  { %v644_v15 = vpop.permute.xlu2 %643 }
 0xa27   :  { %v646_v18 = vmul.f32 %v644_v15, %v638_v16 }
 0xa29   :  { %648 = vrot.lane.b32.xlu1 %v646_v18, %s1490_s20 }
 0xa2c   :  { %v711_v22 = vpop.permute.xlu1 %710 }
 0xa2d   :  { %v713_v24 = vmul.f32 %v711_v22, %v705_v23 }
 0xa2f   :  { %715 = vrot.lane.b32.xlu0 %v713_v24, %s1490_s20 }
 0xa60   :  { %v96_v53 = vpop.f32.mrf.mxu0 }
 0xa9b   :  { %v649_v26 = vpop.permute.xlu1 %648 }
 0xa9c   :  { %v1813_v27 = vadd.f32 %v649_v26, %v641_v25 }
 0xa9e   :  { %1426 = vtanh.f32 %v1813_v27 }
 0xaa1   :  { %v716_v30 = vpop.permute.xlu0 %715 }
 0xaa2   :  { %v1817_v32 = vadd.f32 %v716_v30, %v708_v29 }
 0xaa4   :  { %v1427_v31 = vpop.eup %1426  ;;  %1428 = vtanh.f32 %v1817_v32 }
 0xaa5   :  { %654 = vrot.lane.b32.xlu0 %v1427_v31, %s1489_s19 }
 0xaaa   :  { %v1429_v46 = vpop.eup %1428 }
 0xaab   :  { %721 = vrot.lane.b32.xlu2 %v1429_v46, %s1489_s19 }
 0xb05   :  { %v722_v48 = vpop.permute.xlu2 %721 }
 0xb06   :  { %v724_v44 = vmul.f32 %v722_v48, %v705_v23 }
 0xb08   :  { %726 = vrot.lane.b32.xlu1 %v724_v44, %s1490_s20 }
 0xb17   :  { %v655_v43 = vpop.permute.xlu0 %654 }
 0xb18   :  { %v1823_v49 = vmul.f32 %v655_v43, %v638_v16 }
 0xb1a   :  { %729 = vrot.lane.b32.xlu2 %v1823_v49, %s1489_s19 }
 0xb74   :  { %v730_v28 = vpop.permute.xlu2 %729 }
 0xb7a   :  { %v727_v51 = vpop.permute.xlu1 %726 }
 0xb7b   :  { %v732_v40 = vsel %vm119_vm5, %v727_v51, %v730_v28  ;;  %1324 = vmatmul.msk.f32.vlgmr.msra.gmra.mxu3 %vm119_vm5, %v727_v51 }
 0xb7c   :  { %1322 = vmatmul.msk.f32.vlgmr.msra.gmra.mxu2 %vm193_vm6, %v732_v40  ;;  %1083 = vmatpush.msra.mxu3 %v1539_v0 }
 0xb7e   :  { %1084 = vmatpush.msra.mxu3 %v1544_v1 }
 0xb80   :  { %1085 = vmatpush.msra.mxu3 %v1556_v4 }
 0xb82   :  { %1086 = vmatpush.msra.mxu3 %v1566_v6 }
 0xbfe   :  { %v818_v54 = vpop.f32.mrf.mxu3 }
 0xbff   :  { %v821_v55 = vadd.f32 %v818_v54, %v96_v53  ;;  %v753_v56 = vpop.f32.mrf.mxu2  ;;  %v1870_v53 = vld [vmem:[%s1998_s3] ss:$0 sm:$0xff] }
 0xc00   :  { %v754_v33 = vadd.f32 %v1694_v50, %v753_v56 }
 0xc01   :  { %v822_v57 = vadd.f32 %v1581_v9, %v821_v55 }
 0xc02   :  { %1430 = vtanh.f32 %v754_v33  ;;  %v1323_v0 = vmul.f32 -1.442695, %v754_v33 }
 0xc03   :  { %1432 = vtanh.f32 %v822_v57  ;;  %v1325_v1 = vmul.f32 -1.442695, %v822_v57 }
 0xc04   :  { %1434 = vpow2.f32 %v1323_v0 }
 0xc05   :  { %1436 = vpow2.f32 %v1325_v1 }
 0xc08   :  { %v1431_v58 = vpop.eup %1430 }
 0xc09   :  { %v1433_v34 = vpop.eup %1432  ;;  %778 = vrot.lane.b32.xlu1 %v1431_v58, %s1489_s19 }
 0xc0a   :  { %845 = vrot.lane.b32.xlu0 %v1433_v34, %s1489_s19  ;;  %v1435_v4 = vpop.eup %1434 }
 0xc0b   :  { %v1437_v6 = vpop.eup %1436  ;;  %v759_v59 = vadd.f32 1.0, %v1435_v4 }
 0xc0c   :  { %v826_v35 = vadd.f32 1.0, %v1437_v6 }
 0xc0d   :  { %1438 = vrcp.f32 %v759_v59  ;;  %v771_v63 = vand.u32 2147483648, %v759_v59  ;;  %vm765_vm15 = vweird.f32 %v759_v59  ;;  %v769_v3 = vand.u32 2147483647, %v759_v59 }
 0xc0e   :  { %1440 = vrcp.f32 %v826_v35  ;;  %v838_v5 = vand.u32 2147483648, %v826_v35  ;;  %vm832_vm2 = vweird.f32 %v826_v35  ;;  %v836_v7 = vand.u32 2147483647, %v826_v35 }
 0xc0f   :  { %v772_v10 = vor.u32 1.1754944e-38, %v771_v63  ;;  %vm770_vm4 = vcmp.eq.f32.partialorder %v769_v3, 8.507059e+37 }
 0xc10   :  { %v839_v12 = vor.u32 1.1754944e-38, %v838_v5  ;;  %vm837_vm7 = vcmp.eq.f32.partialorder %v836_v7, 8.507059e+37 }
 0xc13   :  { %v1439_v36 = vpop.eup %1438 }
 0xc14   :  { %v1441_v9 = vpop.eup %1440  ;;  %v761_v37 = vmul.f32 %v1439_v36, %v759_v59  ;;  %vm766_vm13 = vweird.f32 %v1439_v36 }
 0xc15   :  { %v828_v38 = vmul.f32 %v1441_v9, %v826_v35  ;;  %vm833_vm14 = vweird.f32 %v1441_v9  ;;  %vm767_vm1 = vmor %vm765_vm15, %vm766_vm13 }
 0xc16   :  { %v762_v39 = vsub.f32 1.0, %v761_v37  ;;  %vm834_vm3 = vmor %vm832_vm2, %vm833_vm14 }
 0xc17   :  { %v829_v42 = vsub.f32 1.0, %v828_v38 }
 0xc18   :  { %v763_v60 = vmul.f32 %v1439_v36, %v762_v39 }
 0xc19   :  { %v830_v61 = vmul.f32 %v1441_v9, %v829_v42 }
 0xc1a   :  { %v764_v62 = vadd.f32 %v1439_v36, %v763_v60 }
 0xc1b   :  { %v831_v2 = vadd.f32 %v1441_v9, %v830_v61 }
 0xc1c   :  { %v768_v8 = vsel %vm767_vm1, %v1439_v36, %v764_v62 }
 0xc1d   :  { %v835_v11 = vsel %vm834_vm3, %v1441_v9, %v831_v2  ;;  %v773_v14 = vsel %vm770_vm4, %v772_v10, %v768_v8 }
 0xc1e   :  { %v840_v17 = vsel %vm837_vm7, %v839_v12, %v835_v11  ;;  %v776_v23 = vmul.f32 %v773_v14, %v1813_v27  ;;  %v35_v27 = vld [vmem:[%s1997_s0 + $0x30] sm:$0xff] }
 0xc1f   :  { %v843_v19 = vmul.f32 %v840_v17, %v1817_v32  ;;  %1303 = vmatmul.msk.f32.gmra.mxu0 %vm39_vm0, %v35_v27 }
 0xc7b   :  { %v779_v13 = vpop.permute.xlu1 %778 }
 0xc7c   :  { %v781_v15 = vmul.f32 %v779_v13, %v773_v14  ;;  %v846_v16 = vpop.permute.xlu0 %845 }
 0xc7d   :  { %v848_v18 = vmul.f32 %v846_v16, %v840_v17 }
 0xc7e   :  { %783 = vrot.lane.b32.xlu0 %v781_v15, %s1490_s20 }
 0xc7f   :  { %850 = vrot.lane.b32.xlu2 %v848_v18, %s1490_s20 }
 0xc9c   :  { %v99_v28 = vpop.f32.mrf.mxu0 }
 0xcd9   :  { %v851_v20 = vpop.permute.xlu2 %850 }
 0xcda   :  { %v1845_v21 = vadd.f32 %v851_v20, %v843_v19 }
 0xcdc   :  { %1442 = vtanh.f32 %v1845_v21 }
 0xce2   :  { %v1443_v22 = vpop.eup %1442 }
 0xce3   :  { %856 = vrot.lane.b32.xlu1 %v1443_v22, %s1489_s19 }
 0xcf0   :  { %v784_v24 = vpop.permute.xlu0 %783 }
 0xcf1   :  { %v1850_v25 = vadd.f32 %v784_v24, %v776_v23 }
 0xcf3   :  { %1444 = vtanh.f32 %v1850_v25 }
 0xcf9   :  { %v1445_v26 = vpop.eup %1444 }
 0xcfa   :  { %789 = vrot.lane.b32.xlu2 %v1445_v26, %s1489_s19 }
 0xd54   :  { %v790_v29 = vpop.permute.xlu2 %789 }
 0xd55   :  { %v1854_v30 = vmul.f32 %v790_v29, %v773_v14  ;;  %v857_v32 = vpop.permute.xlu1 %856 }
 0xd56   :  { %v859_v31 = vmul.f32 %v857_v32, %v840_v17 }
 0xd57   :  { %864 = vrot.lane.b32.xlu1 %v1854_v30, %s1489_s19 }
 0xd58   :  { %861 = vrot.lane.b32.xlu0 %v859_v31, %s1490_s20 }
 0xdc9   :  { %v865_v46 = vpop.permute.xlu1 %864 }
 0xdca   :  { %v862_v48 = vpop.permute.xlu0 %861 }
 0xdcb   :  { %v867_v44 = vsel %vm119_vm5, %v862_v48, %v865_v46  ;;  %1328 = vmatmul.msk.f32.vlgmr.msrb.gmra.mxu3 %vm119_vm5, %v862_v48 }
 0xdcc   :  { %1326 = vmatmul.msk.f32.vlgmr.msrb.gmra.mxu1 %vm193_vm6, %v867_v44 }
 0xe49   :  { %v888_v43 = vpop.f32.mrf.mxu1 }
 0xe4a   :  { %v889_v41 = vadd.f32 %v1694_v50, %v888_v43 }
 0xe4c   :  { %1446 = vtanh.f32 %v889_v41  ;;  %v1327_v58 = vmul.f32 -1.442695, %v889_v41 }
 0xe4e   :  { %v953_v51 = vpop.f32.mrf.mxu3 }
 0xe4f   :  { %v956_v40 = vadd.f32 %v953_v51, %v99_v28  ;;  %v1904_v28 = vld [vmem:[%s2000_s5] ss:$0 sm:$0xff] }
 0xe51   :  { %v957_v54 = vadd.f32 %v1870_v53, %v956_v40 }
 0xe52   :  { %v1447_v55 = vpop.eup %1446 }
 0xe53   :  { %1448 = vtanh.f32 %v957_v54  ;;  %913 = vrot.lane.b32.xlu0 %v1447_v55, %s1489_s19  ;;  %v1329_v33 = vmul.f32 -1.442695, %v957_v54 }
 0xe55   :  { %1450 = vpow2.f32 %v1329_v33 }
 0xe59   :  { %v1449_v56 = vpop.eup %1448 }
 0xe5a   :  { %980 = vrot.lane.b32.xlu2 %v1449_v56, %s1489_s19 }
 0xe5b   :  { %v1451_v50 = vpop.eup %1450 }
 0xe5c   :  { %v961_v57 = vadd.f32 1.0, %v1451_v50 }
 0xe5e   :  { %1452 = vrcp.f32 %v961_v57  ;;  %v973_v36 = vand.u32 2147483648, %v961_v57  ;;  %vm967_vm9 = vweird.f32 %v961_v57  ;;  %v971_v37 = vand.u32 2147483647, %v961_v57 }
 0xe5f   :  { %1454 = vpow2.f32 %v1327_v58 }
 0xe60   :  { %v974_v39 = vor.u32 1.1754944e-38, %v973_v36  ;;  %vm972_vm11 = vcmp.eq.f32.partialorder %v971_v37, 8.507059e+37 }
 0xe64   :  { %v1453_v34 = vpop.eup %1452 }
 0xe65   :  { %v963_v0 = vmul.f32 %v1453_v34, %v961_v57  ;;  %v1455_v1 = vpop.eup %1454  ;;  %vm968_vm8 = vweird.f32 %v1453_v34 }
 0xe66   :  { %v894_v4 = vadd.f32 1.0, %v1455_v1  ;;  %vm969_vm10 = vmor %vm967_vm9, %vm968_vm8 }
 0xe67   :  { %v964_v6 = vsub.f32 1.0, %v963_v0 }
 0xe68   :  { %1456 = vrcp.f32 %v894_v4  ;;  %v906_v5 = vand.u32 2147483648, %v894_v4  ;;  %vm900_vm13 = vweird.f32 %v894_v4  ;;  %v904_v7 = vand.u32 2147483647, %v894_v4 }
 0xe69   :  { %v965_v59 = vmul.f32 %v1453_v34, %v964_v6 }
 0xe6a   :  { %v907_v10 = vor.u32 1.1754944e-38, %v906_v5  ;;  %vm905_vm15 = vcmp.eq.f32.partialorder %v904_v7, 8.507059e+37 }
 0xe6b   :  { %v966_v35 = vadd.f32 %v1453_v34, %v965_v59 }
 0xe6d   :  { %v970_v38 = vsel %vm969_vm10, %v1453_v34, %v966_v35 }
 0xe6e   :  { %v1457_v9 = vpop.eup %1456  ;;  %v975_v61 = vsel %vm972_vm11, %v974_v39, %v970_v38 }
 0xe6f   :  { %v896_v42 = vmul.f32 %v1457_v9, %v894_v4  ;;  %vm901_vm12 = vweird.f32 %v1457_v9  ;;  %v978_v17 = vmul.f32 %v975_v61, %v1845_v21  ;;  %v36_v21 = vld [vmem:[%s1997_s0 + $0x38] sm:$0xff] }
 0xe70   :  { %vm902_vm14 = vmor %vm900_vm13, %vm901_vm12  ;;  %1304 = vmatmul.msk.f32.gmra.mxu0 %vm39_vm0, %v36_v21 }
 0xe71   :  { %v897_v63 = vsub.f32 1.0, %v896_v42 }
 0xe73   :  { %v898_v2 = vmul.f32 %v1457_v9, %v897_v63 }
 0xe75   :  { %v899_v3 = vadd.f32 %v1457_v9, %v898_v2 }
 0xe77   :  { %v903_v8 = vsel %vm902_vm14, %v1457_v9, %v899_v3 }
 0xe78   :  { %v908_v12 = vsel %vm905_vm15, %v907_v10, %v903_v8 }
 0xe79   :  { %v911_v14 = vmul.f32 %v908_v12, %v1850_v25 }
 0xeb4   :  { %v981_v60 = vpop.permute.xlu2 %980 }
 0xeb5   :  { %v983_v62 = vmul.f32 %v981_v60, %v975_v61 }
 0xeb7   :  { %985 = vrot.lane.b32.xlu1 %v983_v62, %s1490_s20 }
 0xec5   :  { %v914_v11 = vpop.permute.xlu0 %913 }
 0xec6   :  { %v916_v13 = vmul.f32 %v914_v11, %v908_v12 }
 0xec8   :  { %918 = vrot.lane.b32.xlu2 %v916_v13, %s1490_s20 }
 0xeed   :  { %v102_v27 = vpop.f32.mrf.mxu0 }
 0xf22   :  { %v919_v15 = vpop.permute.xlu2 %918 }
 0xf23   :  { %v1878_v16 = vadd.f32 %v919_v15, %v911_v14 }
 0xf25   :  { %1458 = vtanh.f32 %v1878_v16 }
 0xf29   :  { %v986_v18 = vpop.permute.xlu1 %985 }
 0xf2a   :  { %v1882_v19 = vadd.f32 %v986_v18, %v978_v17 }
 0xf2b   :  { %v1459_v20 = vpop.eup %1458 }
 0xf2c   :  { %1460 = vtanh.f32 %v1882_v19  ;;  %924 = vrot.lane.b32.xlu1 %v1459_v20, %s1489_s19 }
 0xf32   :  { %v1461_v22 = vpop.eup %1460 }
 0xf33   :  { %991 = vrot.lane.b32.xlu0 %v1461_v22, %s1489_s19 }
 0xf9e   :  { %v925_v23 = vpop.permute.xlu1 %924 }
 0xf9f   :  { %v1887_v24 = vmul.f32 %v925_v23, %v908_v12 }
 0xfa1   :  { %999 = vrot.lane.b32.xlu0 %v1887_v24, %s1489_s19 }
 0xfa5   :  { %v992_v25 = vpop.permute.xlu0 %991 }
 0xfa6   :  { %v994_v26 = vmul.f32 %v992_v25, %v975_v61 }
 0xfa8   :  { %996 = vrot.lane.b32.xlu2 %v994_v26, %s1490_s20 }
0x1002   :  { %v997_v29 = vpop.permute.xlu2 %996 }
0x1003   :  { %1332 = vmatmul.msk.f32.vlgmr.msra.gmra.mxu3 %vm119_vm5, %v997_v29 }
0x1013   :  { %v1000_v32 = vpop.permute.xlu0 %999 }
0x1014   :  { %v1002_v31 = vsel %vm119_vm5, %v997_v29, %v1000_v32 }
0x1015   :  { %1330 = vmatmul.msk.f32.vlgmr.msrb.gmra.mxu2 %vm193_vm6, %v1002_v31 }
0x1086   :  { %v1088_v46 = vpop.f32.mrf.mxu3 }
0x1087   :  { %v1091_v48 = vadd.f32 %v1088_v46, %v102_v27 }
0x1089   :  { %v1092_v44 = vadd.f32 %v1870_v53, %v1091_v48  ;;  %v1215_v48 = vld [vmem:[%s2001_s6 + $0x18] sm:$0xff] }
0x108a   :  { %1345 = vmatpush.msrb.mxu3 %v1215_v48  ;;  %1256 = vmatpush.msra.mxu1 %v1215_v48 }
0x108b   :  { %1462 = vtanh.f32 %v1092_v44  ;;  %v1333_v54 = vmul.f32 -1.442695, %v1092_v44  ;;  %1344 = vmatpush.msra.mxu2 %v1215_v48 }
0x1091   :  { %v1463_v43 = vpop.eup %1462 }
0x1092   :  { %1115 = vrot.lane.b32.xlu2 %v1463_v43, %s1489_s19  ;;  %v1214_v43 = vld [vmem:[%s2001_s6 + $0x10] sm:$0xff] }
0x1093   :  { %1347 = vmatpush.msrb.mxu3 %v1214_v43  ;;  %1257 = vmatpush.msra.mxu1 %v1214_v43 }
0x1094   :  { %1346 = vmatpush.msra.mxu2 %v1214_v43 }
0x1098   :  { %v1023_v41 = vpop.f32.mrf.mxu2 }
0x1099   :  { %v1024_v51 = vadd.f32 %v1904_v28, %v1023_v41 }
0x109b   :  { %1464 = vtanh.f32 %v1024_v51  ;;  %v1331_v0 = vmul.f32 -1.442695, %v1024_v51 }
0x109c   :  { %1466 = vpow2.f32 %v1333_v54 }
0x10a1   :  { %v1465_v40 = vpop.eup %1464 }
0x10a2   :  { %1048 = vrot.lane.b32.xlu1 %v1465_v40, %s1489_s19  ;;  %v1467_v55 = vpop.eup %1466 }
0x10a3   :  { %v1096_v53 = vadd.f32 1.0, %v1467_v55 }
0x10a5   :  { %1468 = vrcp.f32 %v1096_v53  ;;  %v1108_v34 = vand.u32 2147483648, %v1096_v53  ;;  %vm1102_vm1 = vweird.f32 %v1096_v53  ;;  %v1106_v1 = vand.u32 2147483647, %v1096_v53 }
0x10a6   :  { %1470 = vpow2.f32 %v1331_v0 }
0x10a7   :  { %v1109_v6 = vor.u32 1.1754944e-38, %v1108_v34  ;;  %vm1107_vm3 = vcmp.eq.f32.partialorder %v1106_v1, 8.507059e+37 }
0x10ab   :  { %v1469_v56 = vpop.eup %1468 }
0x10ac   :  { %v1098_v33 = vmul.f32 %v1469_v56, %v1096_v53  ;;  %vm1103_vm0 = vweird.f32 %v1469_v56  ;;  %v1471_v9 = vpop.eup %1470 }
0x10ad   :  { %vm1104_vm2 = vmor %vm1102_vm1, %vm1103_vm0  ;;  %v1029_v37 = vadd.f32 1.0, %v1471_v9 }
0x10ae   :  { %v1099_v50 = vsub.f32 1.0, %v1098_v33 }
0x10af   :  { %1472 = vrcp.f32 %v1029_v37  ;;  %v1041_v62 = vand.u32 2147483648, %v1029_v37  ;;  %vm1035_vm7 = vweird.f32 %v1029_v37  ;;  %v1039_v63 = vand.u32 2147483647, %v1029_v37 }
0x10b0   :  { %v1100_v57 = vmul.f32 %v1469_v56, %v1099_v50 }
0x10b1   :  { %v1042_v3 = vor.u32 1.1754944e-38, %v1041_v62  ;;  %vm1040_vm9 = vcmp.eq.f32.partialorder %v1039_v63, 8.507059e+37 }
0x10b2   :  { %v1101_v58 = vadd.f32 %v1469_v56, %v1100_v57 }
0x10b4   :  { %v1105_v4 = vsel %vm1104_vm2, %v1469_v56, %v1101_v58 }
0x10b5   :  { %v1110_v35 = vsel %vm1107_vm3, %v1109_v6, %v1105_v4  ;;  %v1473_v38 = vpop.eup %1472 }
0x10b6   :  { %v1031_v39 = vmul.f32 %v1473_v38, %v1029_v37  ;;  %vm1036_vm4 = vweird.f32 %v1473_v38  ;;  %v1113_v10 = vmul.f32 %v1110_v35, %v1882_v19 }
0x10b7   :  { %vm1037_vm8 = vmor %vm1035_vm7, %vm1036_vm4 }
0x10b8   :  { %v1032_v42 = vsub.f32 1.0, %v1031_v39 }
0x10ba   :  { %v1033_v60 = vmul.f32 %v1473_v38, %v1032_v42 }
0x10bc   :  { %v1034_v61 = vadd.f32 %v1473_v38, %v1033_v60 }
0x10be   :  { %v1038_v2 = vsel %vm1037_vm8, %v1473_v38, %v1034_v61  ;;  %v1357_v38 = vld [vmem:[%s2002_s7] ss:$0 sm:$0xff] }
0x10bf   :  { %v1043_v7 = vsel %vm1040_vm9, %v1042_v3, %v1038_v2 }
0x10c0   :  { %v1046_v14 = vmul.f32 %v1043_v7, %v1878_v16 }
0x10ec   :  { %v1116_v59 = vpop.permute.xlu2 %1115 }
0x10ed   :  { %v1118_v36 = vmul.f32 %v1116_v59, %v1110_v35 }
0x10ef   :  { %1120 = vrot.lane.b32.xlu1 %v1118_v36, %s1490_s20 }
0x1114   :  { %v1049_v5 = vpop.permute.xlu1 %1048 }
0x1115   :  { %v1051_v8 = vmul.f32 %v1049_v5, %v1043_v7 }
0x1117   :  { %1053 = vrot.lane.b32.xlu0 %v1051_v8, %s1490_s20 }
0x1161   :  { %v1121_v11 = vpop.permute.xlu1 %1120 }
0x1162   :  { %v1123_v12 = vadd.f32 %v1121_v11, %v1113_v10 }
0x1164   :  { %1474 = vtanh.f32 %v1123_v12 }
0x116a   :  { %v1475_v13 = vpop.eup %1474 }
0x116b   :  { %1126 = vrot.lane.b32.xlu0 %v1475_v13, %s1489_s19 }
0x1189   :  { %v1054_v15 = vpop.permute.xlu0 %1053 }
0x118a   :  { %v1913_v17 = vadd.f32 %v1054_v15, %v1046_v14 }
0x118c   :  { %1476 = vtanh.f32 %v1913_v17 }
0x1192   :  { %v1477_v18 = vpop.eup %1476 }
0x1193   :  { %1059 = vrot.lane.b32.xlu2 %v1477_v18, %s1489_s19 }
0x11dd   :  { %v1127_v20 = vpop.permute.xlu0 %1126 }
0x11de   :  { %v1129_v22 = vmul.f32 %v1127_v20, %v1110_v35 }
0x11e0   :  { %1131 = vrot.lane.b32.xlu1 %v1129_v22, %s1490_s20 }
0x11ed   :  { %v1060_v19 = vpop.permute.xlu2 %1059 }
0x11ee   :  { %v1062_v23 = vmul.f32 %v1060_v19, %v1043_v7 }
0x11f0   :  { %1134 = vrot.lane.b32.xlu2 %v1062_v23, %s1489_s19 }
0x124a   :  { %v1135_v25 = vpop.permute.xlu2 %1134 }
0x1252   :  { %v1132_v26 = vpop.permute.xlu1 %1131 }
0x1253   :  { %v1137_v16 = vsel %vm119_vm5, %v1132_v26, %v1135_v25 }
0x1254   :  { %1334 = vmatmul.msk.f32.vlgmr.msrb.gmra.mxu0 %vm193_vm6, %v1137_v16 }
0x12d1   :  { %v1158_v21 = vpop.f32.mrf.mxu0 }
0x12d2   :  { %v1159_v29 = vadd.f32 %v1904_v28, %v1158_v21  ;;  %v1212_v28 = vld [vmem:[%s2001_s6] sm:$0xff] }
0x12d4   :  { %1478 = vtanh.f32 %v1159_v29  ;;  %v1335_v31 = vmul.f32 -1.442695, %v1159_v29 }
0x12d6   :  { %1480 = vpow2.f32 %v1335_v31 }
0x12da   :  { %v1479_v32 = vpop.eup %1478 }
0x12db   :  { %1183 = vrot.lane.b32.xlu0 %v1479_v32, %s1489_s19 }
0x12dc   :  { %v1481_v27 = vpop.eup %1480 }
0x12dd   :  { %v1164_v46 = vadd.f32 1.0, %v1481_v27 }
0x12df   :  { %1482 = vrcp.f32 %v1164_v46  ;;  %v1176_v55 = vand.u32 2147483648, %v1164_v46  ;;  %vm1170_vm10 = vweird.f32 %v1164_v46  ;;  %v1174_v53 = vand.u32 2147483647, %v1164_v46 }
0x12e1   :  { %v1177_v33 = vor.u32 1.1754944e-38, %v1176_v55  ;;  %vm1175_vm12 = vcmp.eq.f32.partialorder %v1174_v53, 8.507059e+37 }
0x12e3   :  { %929 = vrot.lane.b32.xlu0 %v1887_v24, %s1490_s20  ;;  %v1213_v24 = vld [vmem:[%s2001_s6 + $0x8] sm:$0xff] }
0x12e4   :  { %1349 = vmatpush.msrb.mxu3 %v1213_v24  ;;  %1258 = vmatpush.msra.mxu1 %v1213_v24 }
0x12e5   :  { %v1483_v44 = vpop.eup %1482  ;;  %1348 = vmatpush.msra.mxu2 %v1213_v24 }
0x12e6   :  { %v1166_v41 = vmul.f32 %v1483_v44, %v1164_v46  ;;  %1351 = vmatpush.msrb.mxu3 %v1212_v28  ;;  %1259 = vmatpush.msra.mxu1 %v1212_v28  ;;  %vm1171_vm6 = vweird.f32 %v1483_v44 }
0x12e7   :  { %1350 = vmatpush.msra.mxu2 %v1212_v28  ;;  %vm1172_vm11 = vmor %vm1170_vm10, %vm1171_vm6 }
0x12e8   :  { %v1167_v51 = vsub.f32 1.0, %v1166_v41 }
0x12ea   :  { %v1168_v40 = vmul.f32 %v1483_v44, %v1167_v51 }
0x12eb   :  { %1064 = vrot.lane.b32.xlu0 %v1062_v23, %s1490_s20 }
0x12ec   :  { %v1169_v54 = vadd.f32 %v1483_v44, %v1168_v40 }
0x12ee   :  { %v1173_v56 = vsel %vm1172_vm11, %v1483_v44, %v1169_v54 }
0x12ef   :  { %v1178_v57 = vsel %vm1175_vm12, %v1177_v33, %v1173_v56 }
0x12f0   :  { %v1181_v6 = vmul.f32 %v1178_v57, %v1913_v17 }
0x134d   :  { %v1184_v50 = vpop.permute.xlu0 %1183 }
0x134e   :  { %v1186_v58 = vmul.f32 %v1184_v50, %v1178_v57 }
0x1350   :  { %1188 = vrot.lane.b32.xlu1 %v1186_v58, %s1490_s20 }
0x1355   :  { %v930_v34 = vpop.permute.xlu0 %929 }
0x1356   :  { %933 = vst.msk [vmem:[#allocation2 + $0x28] sm:$0xff] %vm119_vm5, %v930_v34 }
0x1358   :  { %255 = vrot.lane.b32.xlu1 %v1711_v45, %s1490_s20 }
0x135d   :  { %v1065_v0 = vpop.permute.xlu0 %1064  ;;  %v1209_v1 = vld [vmem:[#allocation2 + $0x28] sm:$0xff] }
0x135e   :  { %1068 = vst.msk [vmem:[#allocation2 + $0x30] sm:$0xff] %vm119_vm5, %v1065_v0  ;;  %1341 = vmatmul.msk.f32.vlgmr.msrb.gmra.mxu3 %vm119_vm5, %v1209_v1 }
0x1360   :  { %389 = vrot.lane.b32.xlu1 %v1750_v52, %s1490_s20 }
0x1365   :  { %v1210_v4 = vld [vmem:[#allocation2 + $0x30] sm:$0xff] }
0x1366   :  { %1342 = vmatmul.msk.f32.gmra.mxu3 %vm119_vm5, %v1210_v4 }
0x1368   :  { %524 = vrot.lane.b32.xlu1 %v1790_v47, %s1490_s20 }
0x13c2   :  { %v1189_v59 = vpop.permute.xlu1 %1188 }
0x13c3   :  { %v1191_v35 = vadd.f32 %v1189_v59, %v1181_v6 }
0x13c5   :  { %1484 = vtanh.f32 %v1191_v35 }
0x13ca   :  { %v256_v45 = vpop.permute.xlu1 %255 }
0x13cb   :  { %v1485_v36 = vpop.eup %1484  ;;  %258 = vst.msk [vmem:[#allocation2] sm:$0xff] %vm119_vm5, %v256_v45 }
0x13cc   :  { %1194 = vrot.lane.b32.xlu2 %v1485_v36, %s1489_s19 }
0x13d2   :  { %v390_v9 = vpop.permute.xlu1 %389  ;;  %v1204_v37 = vld [vmem:[#allocation2] sm:$0xff] }
0x13d3   :  { %393 = vst.msk [vmem:[#allocation2 + $0x8] sm:$0xff] %vm119_vm5, %v390_v9  ;;  %1336 = vmatmul.msk.f32.vlgmr.msra.gmra.mxu1 %vm119_vm5, %v1204_v37 }
0x13d4   :  { %659 = vrot.lane.b32.xlu2 %v1823_v49, %s1490_s20 }
0x13da   :  { %v525_v52 = vpop.permute.xlu1 %524  ;;  %v1205_v47 = vld [vmem:[#allocation2 + $0x8] sm:$0xff] }
0x13db   :  { %528 = vst.msk [vmem:[#allocation2 + $0x10] sm:$0xff] %vm119_vm5, %v525_v52  ;;  %1337 = vmatmul.msk.f32.gmra.mxu1 %vm119_vm5, %v1205_v47 }
0x13dc   :  { %794 = vrot.lane.b32.xlu2 %v1854_v30, %s1490_s20 }
0x13e1   :  { %v1276_v39 = vpop.f32.mrf.mxu3 }
0x13e2   :  { %v1277_v42 = vadd.f32 %v1357_v38, %v1276_v39  ;;  %v1206_v60 = vld [vmem:[#allocation2 + $0x10] sm:$0xff] }
0x13e3   :  { %1338 = vmatmul.msk.f32.gmra.mxu1 %vm119_vm5, %v1206_v60 }
0x13e4   :  { %1290 = vst [vmem:[%s2003_s8 + $0x28] sm:$0xff] %v1277_v42 }
0x13e9   :  { %v1279_v49 = vpop.f32.mrf.mxu3 }
0x13ea   :  { %v1280_v61 = vadd.f32 %v1357_v38, %v1279_v49 }
0x13ec   :  { %1291 = vst [vmem:[%s2003_s8 + $0x30] sm:$0xff] %v1280_v61 }
0x1426   :  { %v1195_v30 = vpop.permute.xlu2 %1194 }
0x1427   :  { %v1197_v62 = vmul.f32 %v1195_v30, %v1178_v57 }
0x1429   :  { %1199 = vrot.lane.b32.xlu0 %v1197_v62, %s1490_s20 }
0x142e   :  { %v660_v63 = vpop.permute.xlu2 %659 }
0x142f   :  { %663 = vst.msk [vmem:[#allocation2 + $0x18] sm:$0xff] %vm119_vm5, %v660_v63 }
0x1436   :  { %v795_v2 = vpop.permute.xlu2 %794  ;;  %v1207_v3 = vld [vmem:[#allocation2 + $0x18] sm:$0xff] }
0x1437   :  { %798 = vst.msk [vmem:[#allocation2 + $0x20] sm:$0xff] %vm119_vm5, %v795_v2  ;;  %1339 = vmatmul.msk.f32.vlgmr.msra.gmra.mxu2 %vm119_vm5, %v1207_v3 }
0x143e   :  { %v1208_v5 = vld [vmem:[#allocation2 + $0x20] sm:$0xff] }
0x143f   :  { %1340 = vmatmul.msk.f32.gmra.mxu2 %vm119_vm5, %v1208_v5 }
0x1450   :  { %v1261_v7 = vpop.f32.mrf.mxu1 }
0x1451   :  { %v1262_v8 = vadd.f32 %v1357_v38, %v1261_v7 }
0x1453   :  { %1285 = vst [vmem:[%s2003_s8] sm:$0xff] %v1262_v8 }
0x1458   :  { %v1264_v10 = vpop.f32.mrf.mxu1 }
0x1459   :  { %v1265_v11 = vadd.f32 %v1357_v38, %v1264_v10 }
0x145b   :  { %1286 = vst [vmem:[%s2003_s8 + $0x8] sm:$0xff] %v1265_v11 }
0x1460   :  { %v1267_v12 = vpop.f32.mrf.mxu1 }
0x1461   :  { %v1268_v13 = vadd.f32 %v1357_v38, %v1267_v12 }
0x1463   :  { %1287 = vst [vmem:[%s2003_s8 + $0x10] sm:$0xff] %v1268_v13 }
0x149b   :  { %v1200_v14 = vpop.permute.xlu0 %1199 }
0x149c   :  { %1203 = vst.msk [vmem:[#allocation2 + $0x38] sm:$0xff] %vm119_vm5, %v1200_v14 }
0x14a3   :  { %v1211_v15 = vld [vmem:[#allocation2 + $0x38] sm:$0xff] }
0x14a4   :  { %1343 = vmatmul.msk.f32.gmra.mxu3 %vm119_vm5, %v1211_v15 }
0x14ba   :  { %v1270_v17 = vpop.f32.mrf.mxu2 }
0x14bb   :  { %v1271_v18 = vadd.f32 %v1357_v38, %v1270_v17 }
0x14bd   :  { %1288 = vst [vmem:[%s2003_s8 + $0x18] sm:$0xff] %v1271_v18 }
0x14c2   :  { %v1273_v20 = vpop.f32.mrf.mxu2 }
0x14c3   :  { %v1274_v22 = vadd.f32 %v1357_v38, %v1273_v20 }
0x14c5   :  { %1289 = vst [vmem:[%s2003_s8 + $0x20] sm:$0xff] %v1274_v22 }
0x1527   :  { %v1282_v19 = vpop.f32.mrf.mxu3 }
0x1528   :  { %v1283_v23 = vadd.f32 %v1357_v38, %v1282_v19 }
0x152a   :  { %1292 = vst [vmem:[%s2003_s8 + $0x38] sm:$0xff] %v1283_v23 }

</bundles_post_ra>
